<compile_context>
chip_gen: v6e
topology: v6e:2x2x1
jax: 0.10.0
libtpu: 0.0.40
codegen_flags: <defaults>
</compile_context>

<pallas_src>
import functools
import jax
import jax.numpy as jnp
from jax import lax
from jax.experimental import pallas as pl
from jax.experimental.pallas import tpu as pltpu


def _layer_norm(y, g, b, eps=1e-5):
    mu = jnp.mean(y, axis=-1, keepdims=True)
    var = jnp.mean((y - mu) ** 2, axis=-1, keepdims=True)
    return (y - mu) * lax.rsqrt(var + eps) * g + b


def _encoder_layer_kernel(x_ref, pos_ref,
                          wqk_ref, bqk_ref, wv_ref, bv_ref,
                          wo_ref, bo_ref,
                          g1_ref, be1_ref,
                          w1_ref, b1_ref, w2_ref, b2_ref,
                          g2_ref, be2_ref,
                          out_ref, heads_scratch, *, nhead, ffn_chunk):
    # Leading batch dim is squeezed by the BlockSpec -> refs are (S, D).
    bf = jnp.bfloat16
    x = x_ref[...]                        # (S, D) f32
    pos = pos_ref[...]                    # (S, D) f32
    S, D = x.shape
    hd = D // nhead

    # TODO(synk): src_mask / src_key_padding_mask not applied (forward uses None).
    qk_in_bf = (x + pos).astype(bf)
    x_bf = x.astype(bf)

    # --- full-width projections: N = 2D / D output width, K = D contraction ---
    qk = jnp.dot(qk_in_bf, wqk_ref[...],
                 preferred_element_type=jnp.float32) + bqk_ref[...]        # (S, 2D)
    v = jnp.dot(x_bf, wv_ref[...],
                preferred_element_type=jnp.float32) + bv_ref[...]          # (S, D)
    q_bf = qk[:, :D].astype(bf)           # 1/sqrt(hd) pre-folded into wq, bq
    k_bf = qk[:, D:].astype(bf)
    v_bf = v.astype(bf)

    # --- per-head attention, statically unrolled (static column slices) ---
    for h in range(nhead):
        lo = h * hd
        # scores = q k^T (NT matmul, no materialized transpose), f32 stats
        s = lax.dot_general(q_bf[:, lo:lo + hd], k_bf[:, lo:lo + hd],
                            (((1,), (1,)), ((), ())),
                            preferred_element_type=jnp.float32)            # (S, S)
        # keep only one (S, S) buffer live: s dies into p, p dies into the matmul
        s = s - jnp.max(s, axis=-1, keepdims=True)
        p = jnp.exp(s)
        denom = jnp.sum(p, axis=-1, keepdims=True)                         # (S, 1)
        o_h = jnp.dot(p.astype(bf), v_bf[:, lo:lo + hd],
                      preferred_element_type=jnp.float32)                  # (S, hd)
        # deferred softmax normalization via EUP reciprocal; write this head's
        # normalized output into the (S, D) scratch at its static column offset.
        heads_scratch[:, lo:lo + hd] = o_h * pl.reciprocal(denom, approx=True)

    # --- single deep-K out_proj: (S, D) @ (D, D) ---
    attn = jnp.dot(heads_scratch[...].astype(bf), wo_ref[...],
                   preferred_element_type=jnp.float32) + bo_ref[...]

    # residual + norm1 (post-norm; dropout is identity at inference)
    y = _layer_norm(x + attn, g1_ref[...], be1_ref[...])

    # --- feed forward, chunked over S (only (chunk, F) intermediate live) ---
    w1 = w1_ref[...]
    b1 = b1_ref[...]
    w2 = w2_ref[...]
    b2 = b2_ref[...]
    g2 = g2_ref[...]
    be2 = be2_ref[...]
    for s0 in range(0, S, ffn_chunk):
        s1 = min(s0 + ffn_chunk, S)
        y_c = y[s0:s1]
        h1 = jnp.dot(y_c.astype(bf), w1,
                     preferred_element_type=jnp.float32) + b1
        h1 = jnp.maximum(h1, 0.0)
        h2 = jnp.dot(h1.astype(bf), w2,
                     preferred_element_type=jnp.float32) + b2
        out_ref[s0:s1, :] = _layer_norm(y_c + h2, g2, be2)


# ----------------------- offline weight packing (hoisted) ----------------------
def _prepare_layer_params(params, nhead):
    """Pack PyTorch-style params into fused / bf16 weights. Call once, reuse."""
    (wq, bq, wk, bk, wv, bv, wo, bo,
     g1, be1, w1, b1, w2, b2, g2, be2) = params
    D = wq.shape[0]
    hd = D // nhead
    scale = 1.0 / (hd ** 0.5)
    bf = jnp.bfloat16
    # fold 1/sqrt(hd) into BOTH wq and bq; fuse Q|K into one (D, 2D) weight
    wqk = jnp.concatenate([wq * scale, wk], axis=-1).astype(bf)   # (D, 2D) bf16
    bqk = jnp.concatenate([bq * scale, bk], axis=-1)              # (1, 2D) f32
    return (wqk, bqk, wv.astype(bf), bv, wo.astype(bf), bo,
            g1, be1, w1.astype(bf), b1, w2.astype(bf), b2, g2, be2)


def prepare_encoder_params(params_list, nhead):
    return [_prepare_layer_params(p, nhead) for p in params_list]


# --------------------------------- wrapper -------------------------------------
def _vmem_limit_bytes():
    cap = 128 * 1024 * 1024
    try:
        info = pltpu.get_tpu_info()
        cap = int(getattr(info, "vmem_capacity_bytes", cap)) or cap
    except Exception:
        pass
    # ~25% headroom for Mosaic internal scratch / semaphores; capped at 100 MiB.
    # -> ~48 MiB on v7x (64 MiB/TC), ~96 MiB on v5e/v6e (128 MiB).
    return min((cap * 3) // 4, 100 * 1024 * 1024)


def _weight_spec(a):
    idx = lambda b: (0, 0)            # constant block index: DMA'd once
    try:
        # single-buffer constant weight blocks (halves resident weight VMEM)
        return pl.BlockSpec(a.shape, idx, pipeline_mode=pl.Buffered(1))
    except TypeError:                 # older BlockSpec without pipeline_mode
        return pl.BlockSpec(a.shape, idx)


def _encoder_layer(x, pos, kparams, nhead):
    """x, pos: (B, S, D) batch-first. One grid step per batch element."""
    B, S, D = x.shape
    ffn_chunk = min(256, S)

    # TODO(synk): on v7x (2 TCs) with B == 1, add a second parallel grid axis
    # over S-tiles so both TensorCores are used.
    in_specs = [pl.BlockSpec((None, S, D), lambda b: (b, 0, 0)),
                pl.BlockSpec((None, S, D), lambda b: (b, 0, 0))]
    in_specs += [_weight_spec(p) for p in kparams]

    return pl.pallas_call(
        functools.partial(_encoder_layer_kernel, nhead=nhead,
                          ffn_chunk=ffn_chunk),
        out_shape=jax.ShapeDtypeStruct((B, S, D), jnp.float32),
        grid=(B,),
        in_specs=in_specs,
        out_specs=pl.BlockSpec((None, S, D), lambda b: (b, 0, 0)),
        scratch_shapes=[pltpu.VMEM((S, D), jnp.float32)],   # per-head outputs
        compiler_params=pltpu.CompilerParams(
            dimension_semantics=("parallel",),
            vmem_limit_bytes=_vmem_limit_bytes()),
    )(x, pos, *kparams)


def transformer_encoder(src, pos_embed, packed_params_list, *, nhead):
    """src, pos_embed: (S, B, D) seq-first (PyTorch convention).
    packed_params_list: output of prepare_encoder_params (hoisted packing)."""
    x = jnp.transpose(src, (1, 0, 2))          # -> (B, S, D), batch-first end-to-end
    p = jnp.transpose(pos_embed, (1, 0, 2))
    for kparams in packed_params_list:
        x = _encoder_layer(x, p, kparams, nhead)
    return jnp.transpose(x, (1, 0, 2))         # -> (S, B, D)


# ----------------- pure-JAX reference (for correctness check) -----------------
def _ref_layer(x, pos, params, nhead):
    (wq, bq, wk, bk, wv, bv, wo, bo, g1, be1, w1, b1, w2, b2, g2, be2) = params
    B, S, D = x.shape
    hd = D // nhead
    qk_in = x + pos
    q = (qk_in @ wq + bq).reshape(B, S, nhead, hd)
    k = (qk_in @ wk + bk).reshape(B, S, nhead, hd)
    v = (x @ wv + bv).reshape(B, S, nhead, hd)
    s = jnp.einsum('bqhd,bkhd->bhqk', q, k) / (hd ** 0.5)
    p = jax.nn.softmax(s, axis=-1)
    attn = jnp.einsum('bhqk,bkhd->bqhd', p, v).reshape(B, S, D)
    attn = attn @ wo + bo
    y = _layer_norm(x + attn, g1, be1)
    h2 = jnp.maximum(y @ w1 + b1, 0.0) @ w2 + b2
    return _layer_norm(y + h2, g2, be2)


def transformer_encoder_ref(src, pos_embed, params_list, *, nhead):
    x = jnp.transpose(src, (1, 0, 2))
    p = jnp.transpose(pos_embed, (1, 0, 2))
    for params in params_list:
        x = _ref_layer(x, p, params, nhead)
    return jnp.transpose(x, (1, 0, 2))


# ----------------------- deterministic parameter init -------------------------
def init_layer_params(key, d_model, dim_ff):
    ks = jax.random.split(key, 10)
    r = lambda k, shp: jax.random.normal(k, shp, jnp.float32) * 0.05
    wq, wk, wv = r(ks[0], (d_model, d_model)), r(ks[1], (d_model, d_model)), r(ks[2], (d_model, d_model))
    bq, bk, bv = r(ks[3], (1, d_model)), r(ks[4], (1, d_model)), r(ks[5], (1, d_model))
    wo, bo = r(ks[6], (d_model, d_model)), r(ks[7], (1, d_model))
    g1, be1 = jnp.ones((1, d_model), jnp.float32), jnp.zeros((1, d_model), jnp.float32)
    w1, b1 = r(ks[8], (d_model, dim_ff)), jnp.zeros((1, dim_ff), jnp.float32)
    w2, b2 = r(ks[9], (dim_ff, d_model)), jnp.zeros((1, d_model), jnp.float32)
    g2, be2 = jnp.ones((1, d_model), jnp.float32), jnp.zeros((1, d_model), jnp.float32)
    return (wq, bq, wk, bk, wv, bv, wo, bo, g1, be1, w1, b1, w2, b2, g2, be2)


if __name__ == "__main__":
    S, B, D, H, F, L = 16, 2, 64, 4, 128, 2   # seq, batch, d_model, nhead, dim_ff, layers
    key = jax.random.PRNGKey(0)
    k_src, k_pos, k_par = jax.random.split(key, 3)
    src = jax.random.normal(k_src, (S, B, D), jnp.float32)
    pos = jax.random.normal(k_pos, (S, B, D), jnp.float32)
    params_list = [init_layer_params(k, D, F) for k in jax.random.split(k_par, L)]

    # weight packing hoisted out of the forward path (done once, reused)
    packed = prepare_encoder_params(params_list, nhead=H)

    out = transformer_encoder(src, pos, packed, nhead=H)
    out = jax.block_until_ready(out)

    ref = transformer_encoder_ref(src, pos, params_list, nhead=H)
    assert out.shape == (S, B, D)
    # bf16 MXU operands with f32 accumulation + approx softmax reciprocal
    # -> loosened tolerance vs the f32 reference.
    assert jnp.allclose(out, ref, atol=4e-2, rtol=4e-2), "mismatch vs pure-JAX reference"
    print("KERNEL_OK")
</pallas_src>

<mosaic_0001>
module attributes {stable_mosaic.version = 11 : i64} {
  func.func @_encoder_layer_kernel(%arg0: i32, %arg1: memref<1x16x64xf32, #tpu.memory_space<vmem>>, %arg2: memref<1x16x64xf32, #tpu.memory_space<vmem>>, %arg3: memref<64x128xbf16, #tpu.memory_space<vmem>>, %arg4: memref<1x128xf32, #tpu.memory_space<vmem>>, %arg5: memref<64x64xbf16, #tpu.memory_space<vmem>>, %arg6: memref<1x64xf32, #tpu.memory_space<vmem>>, %arg7: memref<64x64xbf16, #tpu.memory_space<vmem>>, %arg8: memref<1x64xf32, #tpu.memory_space<vmem>>, %arg9: memref<1x64xf32, #tpu.memory_space<vmem>>, %arg10: memref<1x64xf32, #tpu.memory_space<vmem>>, %arg11: memref<64x128xbf16, #tpu.memory_space<vmem>>, %arg12: memref<1x128xf32, #tpu.memory_space<vmem>>, %arg13: memref<128x64xbf16, #tpu.memory_space<vmem>>, %arg14: memref<1x64xf32, #tpu.memory_space<vmem>>, %arg15: memref<1x64xf32, #tpu.memory_space<vmem>>, %arg16: memref<1x64xf32, #tpu.memory_space<vmem>>, %arg17: memref<1x16x64xf32, #tpu.memory_space<vmem>>, %arg18: memref<16x64xf32, #tpu.memory_space<vmem>>) attributes {dimension_semantics = [#tpu.dimension_semantics<parallel>], iteration_bounds = array<i64: 2>, scalar_prefetch = 0 : i64, scratch_operands = 1 : i64, tpu.core_type = #tpu.core_type<tc>, window_params = [{transform_indices = @transform_0, window_bounds = array<i64: 1, 16, 64>}, {transform_indices = @transform_1, window_bounds = array<i64: 1, 16, 64>}, {pipeline_mode = #tpu.pipeline_mode<synchronous>, transform_indices = @transform_2, window_bounds = array<i64: 64, 128>}, {pipeline_mode = #tpu.pipeline_mode<synchronous>, transform_indices = @transform_3, window_bounds = array<i64: 1, 128>}, {pipeline_mode = #tpu.pipeline_mode<synchronous>, transform_indices = @transform_4, window_bounds = array<i64: 64, 64>}, {pipeline_mode = #tpu.pipeline_mode<synchronous>, transform_indices = @transform_5, window_bounds = array<i64: 1, 64>}, {pipeline_mode = #tpu.pipeline_mode<synchronous>, transform_indices = @transform_6, window_bounds = array<i64: 64, 64>}, {pipeline_mode = #tpu.pipeline_mode<synchronous>, transform_indices = @transform_7, window_bounds = array<i64: 1, 64>}, {pipeline_mode = #tpu.pipeline_mode<synchronous>, transform_indices = @transform_8, window_bounds = array<i64: 1, 64>}, {pipeline_mode = #tpu.pipeline_mode<synchronous>, transform_indices = @transform_9, window_bounds = array<i64: 1, 64>}, {pipeline_mode = #tpu.pipeline_mode<synchronous>, transform_indices = @transform_10, window_bounds = array<i64: 64, 128>}, {pipeline_mode = #tpu.pipeline_mode<synchronous>, transform_indices = @transform_11, window_bounds = array<i64: 1, 128>}, {pipeline_mode = #tpu.pipeline_mode<synchronous>, transform_indices = @transform_12, window_bounds = array<i64: 128, 64>}, {pipeline_mode = #tpu.pipeline_mode<synchronous>, transform_indices = @transform_13, window_bounds = array<i64: 1, 64>}, {pipeline_mode = #tpu.pipeline_mode<synchronous>, transform_indices = @transform_14, window_bounds = array<i64: 1, 64>}, {pipeline_mode = #tpu.pipeline_mode<synchronous>, transform_indices = @transform_15, window_bounds = array<i64: 1, 64>}, {transform_indices = @transform_16, window_bounds = array<i64: 1, 16, 64>}]} {
    %c0 = arith.constant 0 : index
    %c0_0 = arith.constant 0 : index
    %c0_1 = arith.constant 0 : index
    %0 = vector.load %arg1[%c0, %c0_0, %c0_1] : memref<1x16x64xf32, #tpu.memory_space<vmem>>, vector<1x16x64xf32>
    %1 = vector.shape_cast %0 : vector<1x16x64xf32> to vector<16x64xf32>
    %c0_2 = arith.constant 0 : index
    %c0_3 = arith.constant 0 : index
    %c0_4 = arith.constant 0 : index
    %2 = vector.load %arg2[%c0_2, %c0_3, %c0_4] : memref<1x16x64xf32, #tpu.memory_space<vmem>>, vector<1x16x64xf32>
    %3 = vector.shape_cast %2 : vector<1x16x64xf32> to vector<16x64xf32>
    %4 = arith.addf %1, %3 : vector<16x64xf32>
    %5 = arith.truncf %4 : vector<16x64xf32> to vector<16x64xbf16>
    %6 = arith.truncf %1 : vector<16x64xf32> to vector<16x64xbf16>
    %c0_5 = arith.constant 0 : index
    %c0_6 = arith.constant 0 : index
    %7 = vector.load %arg3[%c0_5, %c0_6] : memref<64x128xbf16, #tpu.memory_space<vmem>>, vector<64x128xbf16>
    %cst = arith.constant dense<0.000000e+00> : vector<16x128xf32>
    %8 = tpu.matmul %5, %7, %cst {dimension_numbers = #tpu.dot_dimension_numbers<[1], [0], [0], [1], [0, 0, 1, 1], [], []>} : vector<16x64xbf16>, vector<64x128xbf16>, vector<16x128xf32> -> vector<16x128xf32>
    %c0_7 = arith.constant 0 : index
    %c0_8 = arith.constant 0 : index
    %9 = vector.load %arg4[%c0_7, %c0_8] : memref<1x128xf32, #tpu.memory_space<vmem>>, vector<1x128xf32>
    %10 = vector.broadcast %9 : vector<1x128xf32> to vector<16x128xf32>
    %11 = arith.addf %8, %10 : vector<16x128xf32>
    %c0_9 = arith.constant 0 : index
    %c0_10 = arith.constant 0 : index
    %12 = vector.load %arg5[%c0_9, %c0_10] : memref<64x64xbf16, #tpu.memory_space<vmem>>, vector<64x64xbf16>
    %cst_11 = arith.constant dense<0.000000e+00> : vector<16x64xf32>
    %13 = tpu.matmul %6, %12, %cst_11 {dimension_numbers = #tpu.dot_dimension_numbers<[1], [0], [0], [1], [0, 0, 1, 1], [], []>} : vector<16x64xbf16>, vector<64x64xbf16>, vector<16x64xf32> -> vector<16x64xf32>
    %c0_12 = arith.constant 0 : index
    %c0_13 = arith.constant 0 : index
    %14 = vector.load %arg6[%c0_12, %c0_13] : memref<1x64xf32, #tpu.memory_space<vmem>>, vector<1x64xf32>
    %15 = vector.broadcast %14 : vector<1x64xf32> to vector<16x64xf32>
    %16 = arith.addf %13, %15 : vector<16x64xf32>
    %17 = vector.extract_strided_slice %11 {offsets = [0, 0], sizes = [16, 64], strides = [1, 1]} : vector<16x128xf32> to vector<16x64xf32>
    %18 = arith.truncf %17 : vector<16x64xf32> to vector<16x64xbf16>
    %19 = vector.extract_strided_slice %11 {offsets = [0, 64], sizes = [16, 64], strides = [1, 1]} : vector<16x128xf32> to vector<16x64xf32>
    %20 = arith.truncf %19 : vector<16x64xf32> to vector<16x64xbf16>
    %21 = arith.truncf %16 : vector<16x64xf32> to vector<16x64xbf16>
    %22 = vector.extract_strided_slice %18 {offsets = [0, 0], sizes = [16, 16], strides = [1, 1]} : vector<16x64xbf16> to vector<16x16xbf16>
    %23 = vector.extract_strided_slice %20 {offsets = [0, 0], sizes = [16, 16], strides = [1, 1]} : vector<16x64xbf16> to vector<16x16xbf16>
    %cst_14 = arith.constant dense<0.000000e+00> : vector<16x16xf32>
    %24 = tpu.matmul %22, %23, %cst_14 {dimension_numbers = #tpu.dot_dimension_numbers<[1], [1], [0], [0], [0, 0, 1, 0], [], []>} : vector<16x16xbf16>, vector<16x16xbf16>, vector<16x16xf32> -> vector<16x16xf32>
    %cst_15 = arith.constant dense<0xFF800000> : vector<16xf32>
    %25 = vector.multi_reduction <maximumf>, %24, %cst_15 [1] : vector<16x16xf32> to vector<16xf32>
    %26 = vector.shape_cast %25 : vector<16xf32> to vector<16x1xf32>
    %27 = vector.broadcast %26 : vector<16x1xf32> to vector<16x16xf32>
    %28 = arith.subf %24, %27 : vector<16x16xf32>
    %29 = math.exp %28 : vector<16x16xf32>
    %cst_16 = arith.constant dense<0.000000e+00> : vector<16xf32>
    %30 = vector.multi_reduction <add>, %29, %cst_16 [1] : vector<16x16xf32> to vector<16xf32>
    %31 = vector.shape_cast %30 : vector<16xf32> to vector<16x1xf32>
    %32 = arith.truncf %29 : vector<16x16xf32> to vector<16x16xbf16>
    %33 = vector.extract_strided_slice %21 {offsets = [0, 0], sizes = [16, 16], strides = [1, 1]} : vector<16x64xbf16> to vector<16x16xbf16>
    %cst_17 = arith.constant dense<0.000000e+00> : vector<16x16xf32>
    %34 = tpu.matmul %32, %33, %cst_17 {dimension_numbers = #tpu.dot_dimension_numbers<[1], [0], [0], [1], [0, 0, 1, 1], [], []>} : vector<16x16xbf16>, vector<16x16xbf16>, vector<16x16xf32> -> vector<16x16xf32>
    %35 = tpu.reciprocal %31 {approx = true} : vector<16x1xf32> -> vector<16x1xf32>
    %36 = vector.broadcast %35 : vector<16x1xf32> to vector<16x16xf32>
    %37 = arith.mulf %34, %36 : vector<16x16xf32>
    %c0_18 = arith.constant 0 : index
    %c0_19 = arith.constant 0 : index
    %38 = vector.load %arg18[%c0_18, %c0_19] : memref<16x64xf32, #tpu.memory_space<vmem>>, vector<16x16xf32>
    tpu.vector_store %arg18[%c0_18, %c0_19], %37 {strides = array<i32>} : memref<16x64xf32, #tpu.memory_space<vmem>>, vector<16x16xf32>,
    %39 = vector.extract_strided_slice %18 {offsets = [0, 16], sizes = [16, 16], strides = [1, 1]} : vector<16x64xbf16> to vector<16x16xbf16>
    %40 = vector.extract_strided_slice %20 {offsets = [0, 16], sizes = [16, 16], strides = [1, 1]} : vector<16x64xbf16> to vector<16x16xbf16>
    %cst_20 = arith.constant dense<0.000000e+00> : vector<16x16xf32>
    %41 = tpu.matmul %39, %40, %cst_20 {dimension_numbers = #tpu.dot_dimension_numbers<[1], [1], [0], [0], [0, 0, 1, 0], [], []>} : vector<16x16xbf16>, vector<16x16xbf16>, vector<16x16xf32> -> vector<16x16xf32>
    %cst_21 = arith.constant dense<0xFF800000> : vector<16xf32>
    %42 = vector.multi_reduction <maximumf>, %41, %cst_21 [1] : vector<16x16xf32> to vector<16xf32>
    %43 = vector.shape_cast %42 : vector<16xf32> to vector<16x1xf32>
    %44 = vector.broadcast %43 : vector<16x1xf32> to vector<16x16xf32>
    %45 = arith.subf %41, %44 : vector<16x16xf32>
    %46 = math.exp %45 : vector<16x16xf32>
    %cst_22 = arith.constant dense<0.000000e+00> : vector<16xf32>
    %47 = vector.multi_reduction <add>, %46, %cst_22 [1] : vector<16x16xf32> to vector<16xf32>
    %48 = vector.shape_cast %47 : vector<16xf32> to vector<16x1xf32>
    %49 = arith.truncf %46 : vector<16x16xf32> to vector<16x16xbf16>
    %50 = vector.extract_strided_slice %21 {offsets = [0, 16], sizes = [16, 16], strides = [1, 1]} : vector<16x64xbf16> to vector<16x16xbf16>
    %cst_23 = arith.constant dense<0.000000e+00> : vector<16x16xf32>
    %51 = tpu.matmul %49, %50, %cst_23 {dimension_numbers = #tpu.dot_dimension_numbers<[1], [0], [0], [1], [0, 0, 1, 1], [], []>} : vector<16x16xbf16>, vector<16x16xbf16>, vector<16x16xf32> -> vector<16x16xf32>
    %52 = tpu.reciprocal %48 {approx = true} : vector<16x1xf32> -> vector<16x1xf32>
    %53 = vector.broadcast %52 : vector<16x1xf32> to vector<16x16xf32>
    %54 = arith.mulf %51, %53 : vector<16x16xf32>
    %c0_24 = arith.constant 0 : index
    %c16 = arith.constant 16 : index
    %55 = vector.load %arg18[%c0_24, %c16] : memref<16x64xf32, #tpu.memory_space<vmem>>, vector<16x16xf32>
    tpu.vector_store %arg18[%c0_24, %c16], %54 {strides = array<i32>} : memref<16x64xf32, #tpu.memory_space<vmem>>, vector<16x16xf32>,
    %56 = vector.extract_strided_slice %18 {offsets = [0, 32], sizes = [16, 16], strides = [1, 1]} : vector<16x64xbf16> to vector<16x16xbf16>
    %57 = vector.extract_strided_slice %20 {offsets = [0, 32], sizes = [16, 16], strides = [1, 1]} : vector<16x64xbf16> to vector<16x16xbf16>
    %cst_25 = arith.constant dense<0.000000e+00> : vector<16x16xf32>
    %58 = tpu.matmul %56, %57, %cst_25 {dimension_numbers = #tpu.dot_dimension_numbers<[1], [1], [0], [0], [0, 0, 1, 0], [], []>} : vector<16x16xbf16>, vector<16x16xbf16>, vector<16x16xf32> -> vector<16x16xf32>
    %cst_26 = arith.constant dense<0xFF800000> : vector<16xf32>
    %59 = vector.multi_reduction <maximumf>, %58, %cst_26 [1] : vector<16x16xf32> to vector<16xf32>
    %60 = vector.shape_cast %59 : vector<16xf32> to vector<16x1xf32>
    %61 = vector.broadcast %60 : vector<16x1xf32> to vector<16x16xf32>
    %62 = arith.subf %58, %61 : vector<16x16xf32>
    %63 = math.exp %62 : vector<16x16xf32>
    %cst_27 = arith.constant dense<0.000000e+00> : vector<16xf32>
    %64 = vector.multi_reduction <add>, %63, %cst_27 [1] : vector<16x16xf32> to vector<16xf32>
    %65 = vector.shape_cast %64 : vector<16xf32> to vector<16x1xf32>
    %66 = arith.truncf %63 : vector<16x16xf32> to vector<16x16xbf16>
    %67 = vector.extract_strided_slice %21 {offsets = [0, 32], sizes = [16, 16], strides = [1, 1]} : vector<16x64xbf16> to vector<16x16xbf16>
    %cst_28 = arith.constant dense<0.000000e+00> : vector<16x16xf32>
    %68 = tpu.matmul %66, %67, %cst_28 {dimension_numbers = #tpu.dot_dimension_numbers<[1], [0], [0], [1], [0, 0, 1, 1], [], []>} : vector<16x16xbf16>, vector<16x16xbf16>, vector<16x16xf32> -> vector<16x16xf32>
    %69 = tpu.reciprocal %65 {approx = true} : vector<16x1xf32> -> vector<16x1xf32>
    %70 = vector.broadcast %69 : vector<16x1xf32> to vector<16x16xf32>
    %71 = arith.mulf %68, %70 : vector<16x16xf32>
    %c0_29 = arith.constant 0 : index
    %c32 = arith.constant 32 : index
    %72 = vector.load %arg18[%c0_29, %c32] : memref<16x64xf32, #tpu.memory_space<vmem>>, vector<16x16xf32>
    tpu.vector_store %arg18[%c0_29, %c32], %71 {strides = array<i32>} : memref<16x64xf32, #tpu.memory_space<vmem>>, vector<16x16xf32>,
    %73 = vector.extract_strided_slice %18 {offsets = [0, 48], sizes = [16, 16], strides = [1, 1]} : vector<16x64xbf16> to vector<16x16xbf16>
    %74 = vector.extract_strided_slice %20 {offsets = [0, 48], sizes = [16, 16], strides = [1, 1]} : vector<16x64xbf16> to vector<16x16xbf16>
    %cst_30 = arith.constant dense<0.000000e+00> : vector<16x16xf32>
    %75 = tpu.matmul %73, %74, %cst_30 {dimension_numbers = #tpu.dot_dimension_numbers<[1], [1], [0], [0], [0, 0, 1, 0], [], []>} : vector<16x16xbf16>, vector<16x16xbf16>, vector<16x16xf32> -> vector<16x16xf32>
    %cst_31 = arith.constant dense<0xFF800000> : vector<16xf32>
    %76 = vector.multi_reduction <maximumf>, %75, %cst_31 [1] : vector<16x16xf32> to vector<16xf32>
    %77 = vector.shape_cast %76 : vector<16xf32> to vector<16x1xf32>
    %78 = vector.broadcast %77 : vector<16x1xf32> to vector<16x16xf32>
    %79 = arith.subf %75, %78 : vector<16x16xf32>
    %80 = math.exp %79 : vector<16x16xf32>
    %cst_32 = arith.constant dense<0.000000e+00> : vector<16xf32>
    %81 = vector.multi_reduction <add>, %80, %cst_32 [1] : vector<16x16xf32> to vector<16xf32>
    %82 = vector.shape_cast %81 : vector<16xf32> to vector<16x1xf32>
    %83 = arith.truncf %80 : vector<16x16xf32> to vector<16x16xbf16>
    %84 = vector.extract_strided_slice %21 {offsets = [0, 48], sizes = [16, 16], strides = [1, 1]} : vector<16x64xbf16> to vector<16x16xbf16>
    %cst_33 = arith.constant dense<0.000000e+00> : vector<16x16xf32>
    %85 = tpu.matmul %83, %84, %cst_33 {dimension_numbers = #tpu.dot_dimension_numbers<[1], [0], [0], [1], [0, 0, 1, 1], [], []>} : vector<16x16xbf16>, vector<16x16xbf16>, vector<16x16xf32> -> vector<16x16xf32>
    %86 = tpu.reciprocal %82 {approx = true} : vector<16x1xf32> -> vector<16x1xf32>
    %87 = vector.broadcast %86 : vector<16x1xf32> to vector<16x16xf32>
    %88 = arith.mulf %85, %87 : vector<16x16xf32>
    %c0_34 = arith.constant 0 : index
    %c48 = arith.constant 48 : index
    %89 = vector.load %arg18[%c0_34, %c48] : memref<16x64xf32, #tpu.memory_space<vmem>>, vector<16x16xf32>
    tpu.vector_store %arg18[%c0_34, %c48], %88 {strides = array<i32>} : memref<16x64xf32, #tpu.memory_space<vmem>>, vector<16x16xf32>,
    %c0_35 = arith.constant 0 : index
    %c0_36 = arith.constant 0 : index
    %90 = vector.load %arg18[%c0_35, %c0_36] : memref<16x64xf32, #tpu.memory_space<vmem>>, vector<16x64xf32>
    %91 = arith.truncf %90 : vector<16x64xf32> to vector<16x64xbf16>
    %c0_37 = arith.constant 0 : index
    %c0_38 = arith.constant 0 : index
    %92 = vector.load %arg7[%c0_37, %c0_38] : memref<64x64xbf16, #tpu.memory_space<vmem>>, vector<64x64xbf16>
    %cst_39 = arith.constant dense<0.000000e+00> : vector<16x64xf32>
    %93 = tpu.matmul %91, %92, %cst_39 {dimension_numbers = #tpu.dot_dimension_numbers<[1], [0], [0], [1], [0, 0, 1, 1], [], []>} : vector<16x64xbf16>, vector<64x64xbf16>, vector<16x64xf32> -> vector<16x64xf32>
    %c0_40 = arith.constant 0 : index
    %c0_41 = arith.constant 0 : index
    %94 = vector.load %arg8[%c0_40, %c0_41] : memref<1x64xf32, #tpu.memory_space<vmem>>, vector<1x64xf32>
    %95 = vector.broadcast %94 : vector<1x64xf32> to vector<16x64xf32>
    %96 = arith.addf %93, %95 : vector<16x64xf32>
    %97 = arith.addf %1, %96 : vector<16x64xf32>
    %c0_42 = arith.constant 0 : index
    %c0_43 = arith.constant 0 : index
    %98 = vector.load %arg9[%c0_42, %c0_43] : memref<1x64xf32, #tpu.memory_space<vmem>>, vector<1x64xf32>
    %c0_44 = arith.constant 0 : index
    %c0_45 = arith.constant 0 : index
    %99 = vector.load %arg10[%c0_44, %c0_45] : memref<1x64xf32, #tpu.memory_space<vmem>>, vector<1x64xf32>
    %cst_46 = arith.constant dense<0.000000e+00> : vector<16xf32>
    %100 = vector.multi_reduction <add>, %97, %cst_46 [1] : vector<16x64xf32> to vector<16xf32>
    %101 = vector.shape_cast %100 : vector<16xf32> to vector<16x1xf32>
    %cst_47 = arith.constant 6.400000e+01 : f32
    %102 = vector.broadcast %cst_47 : f32 to vector<16x1xf32>
    %103 = arith.divf %101, %102 : vector<16x1xf32>
    %104 = vector.broadcast %103 : vector<16x1xf32> to vector<16x64xf32>
    %105 = arith.subf %97, %104 : vector<16x64xf32>
    %106 = arith.mulf %105, %105 : vector<16x64xf32>
    %cst_48 = arith.constant dense<0.000000e+00> : vector<16xf32>
    %107 = vector.multi_reduction <add>, %106, %cst_48 [1] : vector<16x64xf32> to vector<16xf32>
    %108 = vector.shape_cast %107 : vector<16xf32> to vector<16x1xf32>
    %cst_49 = arith.constant 6.400000e+01 : f32
    %109 = vector.broadcast %cst_49 : f32 to vector<16x1xf32>
    %110 = arith.divf %108, %109 : vector<16x1xf32>
    %111 = vector.broadcast %103 : vector<16x1xf32> to vector<16x64xf32>
    %112 = arith.subf %97, %111 : vector<16x64xf32>
    %cst_50 = arith.constant 9.99999974E-6 : f32
    %113 = vector.broadcast %cst_50 : f32 to vector<16x1xf32>
    %114 = arith.addf %110, %113 : vector<16x1xf32>
    %115 = math.rsqrt %114 : vector<16x1xf32>
    %116 = vector.broadcast %115 : vector<16x1xf32> to vector<16x64xf32>
    %117 = arith.mulf %112, %116 : vector<16x64xf32>
    %118 = vector.broadcast %98 : vector<1x64xf32> to vector<16x64xf32>
    %119 = arith.mulf %117, %118 : vector<16x64xf32>
    %120 = vector.broadcast %99 : vector<1x64xf32> to vector<16x64xf32>
    %121 = arith.addf %119, %120 : vector<16x64xf32>
    %c0_51 = arith.constant 0 : index
    %c0_52 = arith.constant 0 : index
    %122 = vector.load %arg11[%c0_51, %c0_52] : memref<64x128xbf16, #tpu.memory_space<vmem>>, vector<64x128xbf16>
    %c0_53 = arith.constant 0 : index
    %c0_54 = arith.constant 0 : index
    %123 = vector.load %arg12[%c0_53, %c0_54] : memref<1x128xf32, #tpu.memory_space<vmem>>, vector<1x128xf32>
    %c0_55 = arith.constant 0 : index
    %c0_56 = arith.constant 0 : index
    %124 = vector.load %arg13[%c0_55, %c0_56] : memref<128x64xbf16, #tpu.memory_space<vmem>>, vector<128x64xbf16>
    %c0_57 = arith.constant 0 : index
    %c0_58 = arith.constant 0 : index
    %125 = vector.load %arg14[%c0_57, %c0_58] : memref<1x64xf32, #tpu.memory_space<vmem>>, vector<1x64xf32>
    %c0_59 = arith.constant 0 : index
    %c0_60 = arith.constant 0 : index
    %126 = vector.load %arg15[%c0_59, %c0_60] : memref<1x64xf32, #tpu.memory_space<vmem>>, vector<1x64xf32>
    %c0_61 = arith.constant 0 : index
    %c0_62 = arith.constant 0 : index
    %127 = vector.load %arg16[%c0_61, %c0_62] : memref<1x64xf32, #tpu.memory_space<vmem>>, vector<1x64xf32>
    %128 = arith.truncf %121 : vector<16x64xf32> to vector<16x64xbf16>
    %cst_63 = arith.constant dense<0.000000e+00> : vector<16x128xf32>
    %129 = tpu.matmul %128, %122, %cst_63 {dimension_numbers = #tpu.dot_dimension_numbers<[1], [0], [0], [1], [0, 0, 1, 1], [], []>} : vector<16x64xbf16>, vector<64x128xbf16>, vector<16x128xf32> -> vector<16x128xf32>
    %130 = vector.broadcast %123 : vector<1x128xf32> to vector<16x128xf32>
    %131 = arith.addf %129, %130 : vector<16x128xf32>
    %cst_64 = arith.constant 0.000000e+00 : f32
    %132 = vector.broadcast %cst_64 : f32 to vector<16x128xf32>
    %133 = arith.maximumf %131, %132 : vector<16x128xf32>
    %134 = arith.truncf %133 : vector<16x128xf32> to vector<16x128xbf16>
    %cst_65 = arith.constant dense<0.000000e+00> : vector<16x64xf32>
    %135 = tpu.matmul %134, %124, %cst_65 {dimension_numbers = #tpu.dot_dimension_numbers<[1], [0], [0], [1], [0, 0, 1, 1], [], []>} : vector<16x128xbf16>, vector<128x64xbf16>, vector<16x64xf32> -> vector<16x64xf32>
    %136 = vector.broadcast %125 : vector<1x64xf32> to vector<16x64xf32>
    %137 = arith.addf %135, %136 : vector<16x64xf32>
    %138 = arith.addf %121, %137 : vector<16x64xf32>
    %cst_66 = arith.constant dense<0.000000e+00> : vector<16xf32>
    %139 = vector.multi_reduction <add>, %138, %cst_66 [1] : vector<16x64xf32> to vector<16xf32>
    %140 = vector.shape_cast %139 : vector<16xf32> to vector<16x1xf32>
    %cst_67 = arith.constant 6.400000e+01 : f32
    %141 = vector.broadcast %cst_67 : f32 to vector<16x1xf32>
    %142 = arith.divf %140, %141 : vector<16x1xf32>
    %143 = vector.broadcast %142 : vector<16x1xf32> to vector<16x64xf32>
    %144 = arith.subf %138, %143 : vector<16x64xf32>
    %145 = arith.mulf %144, %144 : vector<16x64xf32>
    %cst_68 = arith.constant dense<0.000000e+00> : vector<16xf32>
    %146 = vector.multi_reduction <add>, %145, %cst_68 [1] : vector<16x64xf32> to vector<16xf32>
    %147 = vector.shape_cast %146 : vector<16xf32> to vector<16x1xf32>
    %cst_69 = arith.constant 6.400000e+01 : f32
    %148 = vector.broadcast %cst_69 : f32 to vector<16x1xf32>
    %149 = arith.divf %147, %148 : vector<16x1xf32>
    %150 = vector.broadcast %142 : vector<16x1xf32> to vector<16x64xf32>
    %151 = arith.subf %138, %150 : vector<16x64xf32>
    %cst_70 = arith.constant 9.99999974E-6 : f32
    %152 = vector.broadcast %cst_70 : f32 to vector<16x1xf32>
    %153 = arith.addf %149, %152 : vector<16x1xf32>
    %154 = math.rsqrt %153 : vector<16x1xf32>
    %155 = vector.broadcast %154 : vector<16x1xf32> to vector<16x64xf32>
    %156 = arith.mulf %151, %155 : vector<16x64xf32>
    %157 = vector.broadcast %126 : vector<1x64xf32> to vector<16x64xf32>
    %158 = arith.mulf %156, %157 : vector<16x64xf32>
    %159 = vector.broadcast %127 : vector<1x64xf32> to vector<16x64xf32>
    %160 = arith.addf %158, %159 : vector<16x64xf32>
    %c0_71 = arith.constant 0 : index
    %c0_72 = arith.constant 0 : index
    %c0_73 = arith.constant 0 : index
    %161 = vector.load %arg17[%c0_71, %c0_72, %c0_73] : memref<1x16x64xf32, #tpu.memory_space<vmem>>, vector<1x16x64xf32>
    %162 = vector.shape_cast %161 : vector<1x16x64xf32> to vector<16x64xf32>
    %163 = vector.shape_cast %160 : vector<16x64xf32> to vector<1x16x64xf32>
    tpu.vector_store %arg17[%c0_71, %c0_72, %c0_73], %163 {strides = array<i32>} : memref<1x16x64xf32, #tpu.memory_space<vmem>>, vector<1x16x64xf32>,
    return
  }
  func.func @transform_0(%arg0: i32) -> (i32, i32, i32) {
    %c0_i32 = arith.constant 0 : i32
    %c0_i32_0 = arith.constant 0 : i32
    %c0_i32_1 = arith.constant 0 : i32
    return %arg0, %c0_i32, %c0_i32_0 : i32, i32, i32
  }
  func.func @transform_1(%arg0: i32) -> (i32, i32, i32) {
    %c0_i32 = arith.constant 0 : i32
    %c0_i32_0 = arith.constant 0 : i32
    %c0_i32_1 = arith.constant 0 : i32
    return %arg0, %c0_i32, %c0_i32_0 : i32, i32, i32
  }
  func.func @transform_2(%arg0: i32) -> (i32, i32) {
    %c0_i32 = arith.constant 0 : i32
    %c0_i32_0 = arith.constant 0 : i32
    %c0_i32_1 = arith.constant 0 : i32
    return %c0_i32, %c0_i32_0 : i32, i32
  }
  func.func @transform_3(%arg0: i32) -> (i32, i32) {
    %c0_i32 = arith.constant 0 : i32
    %c0_i32_0 = arith.constant 0 : i32
    %c0_i32_1 = arith.constant 0 : i32
    return %c0_i32, %c0_i32_0 : i32, i32
  }
  func.func @transform_4(%arg0: i32) -> (i32, i32) {
    %c0_i32 = arith.constant 0 : i32
    %c0_i32_0 = arith.constant 0 : i32
    %c0_i32_1 = arith.constant 0 : i32
    return %c0_i32, %c0_i32_0 : i32, i32
  }
  func.func @transform_5(%arg0: i32) -> (i32, i32) {
    %c0_i32 = arith.constant 0 : i32
    %c0_i32_0 = arith.constant 0 : i32
    %c0_i32_1 = arith.constant 0 : i32
    return %c0_i32, %c0_i32_0 : i32, i32
  }
  func.func @transform_6(%arg0: i32) -> (i32, i32) {
    %c0_i32 = arith.constant 0 : i32
    %c0_i32_0 = arith.constant 0 : i32
    %c0_i32_1 = arith.constant 0 : i32
    return %c0_i32, %c0_i32_0 : i32, i32
  }
  func.func @transform_7(%arg0: i32) -> (i32, i32) {
    %c0_i32 = arith.constant 0 : i32
    %c0_i32_0 = arith.constant 0 : i32
    %c0_i32_1 = arith.constant 0 : i32
    return %c0_i32, %c0_i32_0 : i32, i32
  }
  func.func @transform_8(%arg0: i32) -> (i32, i32) {
    %c0_i32 = arith.constant 0 : i32
    %c0_i32_0 = arith.constant 0 : i32
    %c0_i32_1 = arith.constant 0 : i32
    return %c0_i32, %c0_i32_0 : i32, i32
  }
  func.func @transform_9(%arg0: i32) -> (i32, i32) {
    %c0_i32 = arith.constant 0 : i32
    %c0_i32_0 = arith.constant 0 : i32
    %c0_i32_1 = arith.constant 0 : i32
    return %c0_i32, %c0_i32_0 : i32, i32
  }
  func.func @transform_10(%arg0: i32) -> (i32, i32) {
    %c0_i32 = arith.constant 0 : i32
    %c0_i32_0 = arith.constant 0 : i32
    %c0_i32_1 = arith.constant 0 : i32
    return %c0_i32, %c0_i32_0 : i32, i32
  }
  func.func @transform_11(%arg0: i32) -> (i32, i32) {
    %c0_i32 = arith.constant 0 : i32
    %c0_i32_0 = arith.constant 0 : i32
    %c0_i32_1 = arith.constant 0 : i32
    return %c0_i32, %c0_i32_0 : i32, i32
  }
  func.func @transform_12(%arg0: i32) -> (i32, i32) {
    %c0_i32 = arith.constant 0 : i32
    %c0_i32_0 = arith.constant 0 : i32
    %c0_i32_1 = arith.constant 0 : i32
    return %c0_i32, %c0_i32_0 : i32, i32
  }
  func.func @transform_13(%arg0: i32) -> (i32, i32) {
    %c0_i32 = arith.constant 0 : i32
    %c0_i32_0 = arith.constant 0 : i32
    %c0_i32_1 = arith.constant 0 : i32
    return %c0_i32, %c0_i32_0 : i32, i32
  }
  func.func @transform_14(%arg0: i32) -> (i32, i32) {
    %c0_i32 = arith.constant 0 : i32
    %c0_i32_0 = arith.constant 0 : i32
    %c0_i32_1 = arith.constant 0 : i32
    return %c0_i32, %c0_i32_0 : i32, i32
  }
  func.func @transform_15(%arg0: i32) -> (i32, i32) {
    %c0_i32 = arith.constant 0 : i32
    %c0_i32_0 = arith.constant 0 : i32
    %c0_i32_1 = arith.constant 0 : i32
    return %c0_i32, %c0_i32_0 : i32, i32
  }
  func.func @transform_16(%arg0: i32) -> (i32, i32, i32) {
    %c0_i32 = arith.constant 0 : i32
    %c0_i32_0 = arith.constant 0 : i32
    %c0_i32_1 = arith.constant 0 : i32
    return %arg0, %c0_i32, %c0_i32_0 : i32, i32, i32
  }
}

</mosaic_0001>

<bundles_post_ra>
// kernel: tpu_custom_call.1
= control target key start
LH: loop header
LB: loop body
LE: loop exit
PB: predicated region body
PF: predicated region fallthrough
CT: control target
= control target key end

     0   :  { %s2752_s0 = inlined_call_operand.vmem [shape: f32[2,16,64], index: 0, kind: input, shape index: {}]   ;;  %s2753_s1 = inlined_call_operand.vmem [shape: f32[2,16,64], index: 1, kind: input, shape index: {}]   ;;  %s2754_s2 = inlined_call_operand.vmem [shape: bf16[64,128], index: 2, kind: input, shape index: {}]   ;;  %s2755_s3 = inlined_call_operand.vmem [shape: f32[1,128], index: 3, kind: input, shape index: {}]   ;;  %s2756_s4 = inlined_call_operand.hbm [shape: bf16[64,64], index: 4, kind: input, shape index: {}]   ;;  %s2757_s5 = inlined_call_operand.vmem [shape: f32[1,64], index: 5, kind: input, shape index: {}]   ;;  %s2758_s6 = inlined_call_operand.hbm [shape: bf16[64,64], index: 6, kind: input, shape index: {}]   ;;  %s2759_s7 = inlined_call_operand.vmem [shape: f32[1,64], index: 7, kind: input, shape index: {}]   ;;  %s2760_s8 = inlined_call_operand.vmem [shape: f32[1,64], index: 8, kind: input, shape index: {}]   ;;  %s2761_s9 = inlined_call_operand.vmem [shape: f32[1,64], index: 9, kind: input, shape index: {}]   ;;  %s2762_s10 = inlined_call_operand.hbm [shape: bf16[64,128], index: 10, kind: input, shape index: {}]   ;;  %s2763_s11 = inlined_call_operand.vmem [shape: f32[1,128], index: 11, kind: input, shape index: {}]   ;;  %s2764_s12 = inlined_call_operand.vmem [shape: bf16[128,64], index: 12, kind: input, shape index: {}]   ;;  %s2765_s13 = inlined_call_operand.vmem [shape: f32[1,64], index: 13, kind: input, shape index: {}]   ;;  %s2766_s14 = inlined_call_operand.vmem [shape: f32[1,64], index: 14, kind: input, shape index: {}]   ;;  %s2767_s15 = inlined_call_operand.vmem [shape: f32[1,64], index: 15, kind: input, shape index: {}]   ;;  %s2768_s16 = inlined_call_operand.hbm [shape: f32[2,16,64], index: 16, kind: output, shape index: {}]  }
   0x1   :  { %2777 = sst [smem:[#allocation19_spill]] %s2752_s0 }
   0x2   :  { %2778 = sst [smem:[#allocation20_spill]] %s2756_s4 }
   0x3   :  { %2779 = sst [smem:[#allocation21_spill]] %s2758_s6 }
   0x4   :  { %21 = vsyncpa [#allocation4], 0 }
   0x5   :  { %22 = vsyncpa [#allocation7], 0 }
   0x6   :  { %23 = vsyncpa [#allocation5], 0 }
   0x7   :  { %25 = vsyncpa [#allocation5 + $0x1], 0  ;;  %s2404_s21 = smov 0   ;;  %s2406_s22 = smov 0  }
   0x8   :  { %s2408_s23 = smov 0   ;;  %s2410_s24 = smov 0  }
   0x9 LB: > { %2780 = sst [smem:[#allocation13_spill]] %s2288_s21  ;;  %s2425_s25 = sadd.s32 4294967295, %s2300_s24   ;;  %s2300_s24 = sphi %s2410_s24, %s2802_s24   ;;  %s2296_s23 = sphi %s2408_s23, %s2804_s23   ;;  %s2292_s22 = sphi %s2406_s22, %s2806_s22   ;;  %s2288_s21 = sphi %s2404_s21, %s2805_s21  }
   0xa   : > { %2781 = sst [smem:[#allocation14_spill]] %s2296_s23  ;;  %s1778_s26 = sadd.s32 4294967294, %s2300_s24  }
   0xb   : > { %2782 = sst [smem:[#allocation15_spill]] %s2300_s24  ;;  %s2429_s27 = sadd.s32 1, %s2300_s24  }
   0xc   : > { %2783 = sst [smem:[#allocation16_spill]] %s2429_s27  ;;  %s384_s28 = sadd.s32 1, %s2296_s23 }
   0xd   : > { %s381_s29 = ssub.s32 %s2300_s24, %s2429_s27  ;;  %p394_p0 = scmp.ne.s32.totalorder %s2296_s23, %s2292_s22 }
   0xe   : > { %p382_p1 = scmp.eq.s32.totalorder %s381_s29, 0  ;;  %p395_p2 = scmp.eq.s32.totalorder %s2425_s25, 1 }
   0xf   : > { %p400_p3 = scmp.ne.s32.totalorder %s2292_s22, %s2288_s21  ;;  %p401_p4 = scmp.eq.s32.totalorder %s1778_s26, 1 }
  0x10   : > { %s2440_s30 = scalar_select %p382_p1, %s2296_s23, %s384_s28  }
  0x11   : > { %p2442_p5 = por %p395_p2, %p394_p0  ;;  %p2446_p6 = por %p401_p4, %p400_p3 }
  0x12   : > { %2784 = sst [smem:[#allocation17_spill]] %s2440_s30  ;;  %p1779_p7 = scmp.ge.s32.totalorder %s2300_s24, 1 }
  0x13   : > { %s2785_s0 = scalar_select %p2442_p5, 1, 0 }
  0x14   : > { %s2786_s17 = scalar_select %p2446_p6, 1, 0 }
  0x15   : > { %p408_p8 = scmp.lt.s32.totalorder %s2300_s24, 3  ;;  %p2774_p9 = scmp.eq.s32.totalorder %s2425_s25, 0 }
  0x16   : > { %2787 = sst [smem:[#allocation18_spill]] %s2786_s17  ;;  %s2302_s19 = smov [#allocation6]  }
  0x17   : > { %p2453_p10 = pnand %p1779_p7, %p408_p8  ;;  %s442_s20 = sshll.u32 %s2302_s19, 4  ;;  %s443_s20 = int_to_ptr.vmem [resolvable:$true] %s442_s20 }
  0x18   : > { %s2303_s28 = smov [#allocation3]   ;;  %s2304_s30 = smov [#allocation8]  }
  0x19   : > { %p2021_p11 = pneg %p2453_p10  ;;  %s426_s29 = sshll.u32 %s2303_s28, 4  ;;  %s427_s29 = int_to_ptr.vmem [resolvable:$true] %s426_s29 }
  0x1a   : > { %s464_s23 = sshll.u32 %s2304_s30, 4  ;;  %s2165_s27 = scalar_lea.vmem %s443_s20, 512  ;;  %s465_s23 = int_to_ptr.vmem [resolvable:$true] %s464_s23 }
  0x1b   : > { %p2461_p12 = pnand %p2774_p9, %p2021_p11  ;;  %p2166_p0 = scmp.ne.s32.totalorder %s443_s20, %s2165_s27 }
  0x1c   : > { %p2173_p3 = scmp.lt.s32.totalorder %s443_s20, %s443_s20  ;;  %p2174_p4 = scmp.lt.s32.totalorder %s2165_s27, %s2165_s27 }
  0x1d   : > { %p2156_p13 = pneg %p2461_p12 }
  0x1e   : > { %p2175_p7 = por %p2174_p4, %p2173_p3 }
  0x1f   : > { %p2168_p1 = pnand %p2166_p0, %p2156_p13 }
  0x21   : > { %p2169_p2 = pneg %p2168_p1 }
  0x23   : > { %p2176_p8 = pnand %p2175_p7, %p2169_p2 }
  0x25   : > { %2179 = shalt.err (!%p2176_p8)
}
  0x26   : > { %s2305_s19 = smov 64   ;;  %s2306_s28 = smov 4  }
  0x27   : > { %s2790_s6 = sld [smem:[#allocation21_spill]]  ;;  %s2191_s21 = scalar_lea.vmem %s427_s29, 512 }
  0x28   : > { %p2192_p11 = scmp.ne.s32.totalorder %s427_s29, %s2191_s21  ;;  %p2199_p9 = scmp.lt.s32.totalorder %s427_s29, %s427_s29 }
  0x29   : > { %p2200_p6 = scmp.lt.s32.totalorder %s2191_s21, %s2191_s21 }
  0x2a   : > { %p2194_p0 = pnand %p2192_p11, %p2156_p13 }
  0x2b   : > { %p2201_p3 = por %p2200_p6, %p2199_p9 }
  0x2c   : > { %p2195_p1 = pneg %p2194_p0 }
  0x2d   : > { %2027 = dma.hbm_to_vmem [thread:$0]  (!%p2461_p12), %s2790_s6, 512, %s443_s20, [#allocation7], %s2305_s19, %s2305_s19, %s2306_s28  }
  0x2e   : > { %p2202_p2 = pnand %p2201_p3, %p2195_p1 }
  0x30   : > { %2205 = shalt.err (!%p2202_p2)
}
  0x31   : > { %s2791_s4 = sld [smem:[#allocation20_spill]]  ;;  %s2217_s17 = scalar_lea.vmem %s465_s23, 512 }
  0x32   : > { %p2218_p4 = scmp.ne.s32.totalorder %s465_s23, %s2217_s17  ;;  %p2225_p11 = scmp.lt.s32.totalorder %s465_s23, %s465_s23 }
  0x33   : > { %p2226_p0 = scmp.lt.s32.totalorder %s2217_s17, %s2217_s17 }
  0x34   : > { %p2220_p7 = pnand %p2218_p4, %p2156_p13 }
  0x35   : > { %p2227_p5 = por %p2226_p0, %p2225_p11 }
  0x36   : > { %p2221_p8 = pneg %p2220_p7 }
  0x37   : > { %2024 = dma.hbm_to_vmem [thread:$0]  (!%p2461_p12), %s2791_s4, 512, %s427_s29, [#allocation4], %s2305_s19, %s2305_s19, %s2306_s28  }
  0x38   : > { %p2228_p6 = pnand %p2227_p5, %p2221_p8 }
  0x3a   : > { %2231 = shalt.err (!%p2228_p6)
}
  0x3b   : > { %2030 = dma.hbm_to_vmem [thread:$0]  (!%p2461_p12), %s2762_s10, 512, %s465_s23, [#allocation7], %s2305_s19, %s2305_s19, %s2306_s28  }
  0x3c   : > { %511 = sbr.rel (%p2453_p10) target bundleno = 2397 (0x95d), region = 84  ;;  %p2792_p9 = scmp.eq.s32.totalorder (!%p2453_p10), %s2425_s25, 0 }
  0x41   : > { %2275 = dma.done.wait (%p2792_p9), [#allocation4], 512   ;;  %p2793_p13 = pmov %p2792_p9 }
  0x42   : > { %p2794_p1 = pmov %p2792_p9 }
  0x43   : > { %2277 = vsyncadd (%p2793_p13), [#allocation4], 4294966784 }
  0x44   : > { %2279 = dma.done.wait (%p2794_p1), [#allocation7], 1024   ;;  %p2795_p5 = pmov %p2794_p1 }
  0x45   : > { %p574_p3 = scmp.lt.s32.totalorder %s2425_s25, 1  ;;  %v2307_v0 = vmov 0.0   ;;  %vm2308_vm0 = vmmov 0   ;;  %v2090_v1 = vld [vmem:[%s2754_s2 + $0x18] sm:$0xff]   ;;  %s2796_s28 = sld [smem:[#allocation19_spill]]  ;;  %v2091_v2 = vld [vmem:[%s2754_s2 + $0x10] sm:$0xff]  }
  0x46   : > { %2281 = vsyncadd (%p2795_p5), [#allocation7], 4294966272  ;;  %1891 = vmatprep.subr.bf16.mxu1 %v2307_v0  ;;  %1899 = vmatprep.mubr.msk.bf16.mxu1 %vm2308_vm0, %v2307_v0  ;;  %v2092_v3 = vld [vmem:[%s2754_s2 + $0x8] sm:$0xff]   ;;  %vm632_vm1 = vcmask 523264   ;;  %v2093_v8 = vld [vmem:[%s2754_s2] sm:$0xff]   ;;  %s2310_s29 = smov 64  }
  0x47   : > { %s575_s23 = scalar_select %p574_p3, %s2425_s25, 1  ;;  %1915 = vmatprep.subr.bf16.mxu0 %v2307_v0  ;;  %1917 = vmatprep.mubr.msk.bf16.mxu0 %vm2308_vm0, %v2307_v0  ;;  %v1793_v13 = vld [vmem:[%s2755_s3] ss:$0 sm:$0xff]  ;;  %v2094_v20 = vld [vmem:[#allocation3 + $0x18] sm:$0xff]   ;;  %v2096_v22 = vld [vmem:[#allocation3 + $0x8] sm:$0xff]   ;;  %vm765_vm2 = vcmask 130048  }
  0x48   : > { %1892 = vmatpush3.bf16.msra.mxu1 %v2090_v1  ;;  %s2311_s19 = smov 32   ;;  %v2095_v21 = vld [vmem:[#allocation3 + $0x10] sm:$0xff]   ;;  %s2314_s27 = smov 96   ;;  %v2097_v23 = vld [vmem:[#allocation3] sm:$0xff]   ;;  %vm1012_vm3 = vcmask 261248   ;;  %vm1144_vm4 = vcmask 392448  }
  0x49   : > { %s1843_s24 = sshll.u32 %s575_s23, 4  ;;  %1893 = vmatprep.subr.bf16.mxu1 %v2307_v0  ;;  %s2315_s17 = smov 80   ;;  %v1799_v36 = vld [vmem:[%s2757_s5] ss:$0 sm:$0xff]  ;;  %vm1276_vm5 = vcmask 523648  }
  0x4a   : > { %s583_s4 = scalar_lea.vmem %s2753_s1, %s1843_s24  ;;  %s571_s21 = sand.u32 1, %s2292_s22  }
  0x4b   : > { %s578_s30 = scalar_lea.vmem %s2796_s28, %s1843_s24  ;;  %v587_v6 = vld [vmem:[%s583_s4] sm:$0xff]  ;;  %v588_v7 = vld [vmem:[%s583_s4 + $0x8] sm:$0xff]  ;;  %s2309_s24 = smov 112  }
  0x4c   : > { %v2525_v4 = vld [vmem:[%s578_s30] sm:$0xff]  ;;  %v2527_v5 = vld [vmem:[%s578_s30 + $0x8] sm:$0xff]  ;;  %1894 = vmatpush3.bf16.msra.mxu1 %v2091_v2  ;;  %s2312_s28 = smov 48   ;;  %s2313_s30 = smov 16  }
  0x4d   : > { %1895 = vmatprep.subr.bf16.mxu1 %v2307_v0  ;;  %v589_v9 = vadd.f32 %v587_v6, %v2525_v4  ;;  %v590_v10 = vadd.f32 %v588_v7, %v2527_v5  ;;  %v592_v24 = vpack.c.bf16 %v2527_v5, %v2525_v4  ;;  %s1788_s18 = sshll.u32 %s571_s21, 4  ;;  %s1845_s6 = sshll.u32 %s2425_s25, 8 }
  0x4e   : > { %p2797_p12 = scmp.ne.s32.totalorder %s2785_s0, 0 }
  0x4f   : > { %v591_v11 = vpack.c.bf16 %v590_v10, %v589_v9 }
  0x50   : > { %1896 = vmatpush3.bf16.msra.mxu1 %v2092_v3 }
  0x51   : > { %1897 = vmatprep.subr.bf16.mxu1 %v2307_v0 }
  0x54   : > { %1898 = vmatpush3.bf16.msra.mxu1 %v2093_v8 }
  0x55   : > { %1903 = vmatprep.subr.bf16.mxu1 %v2307_v0 }
  0x57   : > { %1900 = vmatmul.mubr.msk.bf16.vlgmr.msra.gmra.mxu1 %vm632_vm1, %v591_v11 }
  0x58   : > { %1911 = vmatprep.mubr.msk.bf16.mxu1 %vm2308_vm0, %v2307_v0  ;;  %1904 = vmatpush3.bf16.msra.mxu1 %v2094_v20 }
  0x59   : > { %1905 = vmatprep.subr.bf16.mxu1 %v2307_v0 }
  0x5c   : > { %1906 = vmatpush3.bf16.msra.mxu1 %v2095_v21 }
  0x5d   : > { %1907 = vmatprep.subr.bf16.mxu1 %v2307_v0 }
  0x60   : > { %1908 = vmatpush3.bf16.msra.mxu1 %v2096_v22 }
  0x61   : > { %1909 = vmatprep.subr.bf16.mxu1 %v2307_v0 }
  0x64   : > { %1910 = vmatpush3.bf16.msra.mxu1 %v2097_v23 }
  0x65   : > { %1921 = vmatprep.subr.bf16.mxu1 %v2307_v0 }
  0x67   : > { %1912 = vmatmul.mubr.msk.bf16.vlgmr.msra.gmra.mxu1 %vm632_vm1, %v592_v24 }
  0x68   : > { %1923 = vmatprep.mubr.msk.bf16.mxu1 %vm2308_vm0, %v2307_v0 }
 0x117   : > { %v670_v12 = vpop.f32.mrf.mxu1 }
 0x118   : > { %v671_v16 = vadd.f32 %v1793_v13, %v670_v12 }
 0x119   : > { %v1901_v14 = vpop.f32.mrf.mxu1 }
 0x11b   : > { %v673_v15 = vpop.f32.mrf.mxu1 }
 0x11c   : > { %v674_v17 = vadd.f32 %v1793_v13, %v673_v15 }
 0x11d   : > { %v1902_v18 = vpop.f32.mrf.mxu1 }
 0x11e   : > { %v760_v19 = vpack.c.bf16 %v674_v17, %v671_v16 }
 0x120   : > { %882 = vrot.lane.b32.xlu1 %v760_v19, %s2309_s24  ;;  %763 = vrot.lane.b32.xlu0 %v760_v19, %s2310_s29 }
 0x124   : > { %1017 = vrot.lane.b32.xlu1 %v760_v19, %s2311_s19  ;;  %884 = vrot.lane.b32.xlu0 %v760_v19, %s2312_s28 }
 0x127   : > { %v753_v37 = vpop.f32.mrf.mxu1 }
 0x128   : > { %1149 = vrot.lane.b32.xlu1 %v760_v19, %s2313_s30  ;;  %1015 = vrot.lane.b32.xlu0 %v760_v19, %s2314_s27  ;;  %v754_v39 = vadd.f32 %v1799_v36, %v753_v37 }
 0x129   : > { %v1913_v38 = vpop.f32.mrf.mxu1 }
 0x12b   : > { %v756_v40 = vpop.f32.mrf.mxu1 }
 0x12c   : > { %1147 = vrot.lane.b32.xlu0 %v760_v19, %s2315_s17  ;;  %v757_v41 = vadd.f32 %v1799_v36, %v756_v40 }
 0x12d   : > { %v1914_v42 = vpop.f32.mrf.mxu1 }
 0x12e   : > { %v761_v43 = vpack.c.bf16 %v757_v41, %v754_v39 }
 0x130   : > { %1922 = vmatpush3.bf16.msra.mxu1 %v761_v43 }
 0x131   : > { %1933 = vmatprep.subr.bf16.mxu1 %v2307_v0 }
 0x192   : > { %v764_v25 = vpop.permute.xlu0 %763  ;;  %v883_v28 = vpop.permute.xlu1 %882 }
 0x193   : > { %v770_v26 = vsel %vm765_vm2, %v764_v25, 0 }
 0x194   : > { %1916 = vmatpush3.bf16.xpose.msra.mxu0 %v770_v26 }
 0x195   : > { %1927 = vmatprep.subr.bf16.mxu0 %v2307_v0 }
 0x196   : > { %v885_v27 = vpop.permute.xlu0 %884  ;;  %v1018_v30 = vpop.permute.xlu1 %1017 }
 0x197   : > { %v890_v29 = vsel %vm765_vm2, %v885_v27, 0  ;;  %v1023_v31 = vsel %vm765_vm2, %v1018_v30, 0 }
 0x19a   : > { %v1150_v32 = vpop.permute.xlu1 %1149  ;;  %v1016_v33 = vpop.permute.xlu0 %1015 }
 0x19b   : > { %1918 = vmatmul.mubr.msk.bf16.vlgmr.msra.gmra.mxu0 %vm765_vm2, %v760_v19  ;;  %v1155_v34 = vsel %vm765_vm2, %v1150_v32, 0 }
 0x19c   : > { %1928 = vmatpush3.bf16.xpose.msra.mxu0 %v890_v29  ;;  %1929 = vmatprep.mubr.msk.bf16.mxu0 %vm2308_vm0, %v2307_v0 }
 0x19d   : > { %1939 = vmatprep.subr.bf16.mxu0 %v2307_v0 }
 0x19e   : > { %v1148_v35 = vpop.permute.xlu0 %1147 }
 0x1a3   : > { %1930 = vmatmul.mubr.msk.bf16.vlgmr.msra.gmra.mxu0 %vm765_vm2, %v883_v28 }
 0x1a4   : > { %1940 = vmatpush3.bf16.xpose.msra.mxu0 %v1023_v31  ;;  %1941 = vmatprep.mubr.msk.bf16.mxu0 %vm2308_vm0, %v2307_v0 }
 0x1a5   : > { %1951 = vmatprep.subr.bf16.mxu0 %v2307_v0 }
 0x1ab   : > { %1942 = vmatmul.mubr.msk.bf16.vlgmr.msra.gmra.mxu0 %vm765_vm2, %v1016_v33 }
 0x1ac   : > { %1952 = vmatpush3.bf16.xpose.msra.mxu0 %v1155_v34  ;;  %1953 = vmatprep.mubr.msk.bf16.mxu0 %vm2308_vm0, %v2307_v0 }
 0x1ad   : > { %1963 = vmatprep.subr.bf16.mxu0 %v2307_v0 }
 0x1b3   : > { %1954 = vmatmul.mubr.msk.bf16.vlgmr.msra.gmra.mxu0 %vm765_vm2, %v1148_v35 }
 0x1b4   : > { %1971 = vmatprep.mubr.msk.bf16.mxu0 %vm2308_vm0, %v2307_v0 }
 0x25b   : > { %v806_v44 = vpop.f32.mrf.mxu0 }
 0x25c   : > { %v813_v45 = vsel %vm765_vm2, %v806_v44, -inf }
 0x25d   : > { %814 = vmax.xlane.f32.xlu1 %v813_v45  ;;  %v1919_v46 = vpop.f32.mrf.mxu0 }
 0x25f   : > { %v809_v47 = vpop.f32.mrf.mxu0 }
 0x260   : > { %v816_v48 = vsel %vm765_vm2, %v809_v47, -inf }
 0x261   : > { %817 = vmax.xlane.f32.xlu0 %v816_v48  ;;  %v1920_v49 = vpop.f32.mrf.mxu0 }
 0x263   : > { %v926_v50 = vpop.f32.mrf.mxu0 }
 0x264   : > { %v933_v51 = vsel %vm765_vm2, %v926_v50, -inf }
 0x265   : > { %934 = vmax.xlane.f32.xlu0 %v933_v51  ;;  %v1931_v52 = vpop.f32.mrf.mxu0 }
 0x267   : > { %v929_v53 = vpop.f32.mrf.mxu0 }
 0x268   : > { %v936_v54 = vsel %vm765_vm2, %v929_v53, -inf }
 0x269   : > { %937 = vmax.xlane.f32.xlu1 %v936_v54  ;;  %v1932_v55 = vpop.f32.mrf.mxu0 }
 0x26b   : > { %v1059_v56 = vpop.f32.mrf.mxu0 }
 0x26c   : > { %v1066_v57 = vsel %vm765_vm2, %v1059_v56, -inf }
 0x26d   : > { %1067 = vmax.xlane.f32.xlu0 %v1066_v57  ;;  %v1943_v58 = vpop.f32.mrf.mxu0 }
 0x26f   : > { %v1062_v59 = vpop.f32.mrf.mxu0 }
 0x270   : > { %v1069_v60 = vsel %vm765_vm2, %v1062_v59, -inf }
 0x271   : > { %1070 = vmax.xlane.f32.xlu1 %v1069_v60  ;;  %v1944_v61 = vpop.f32.mrf.mxu0 }
 0x273   : > { %v1191_v62 = vpop.f32.mrf.mxu0 }
 0x274   : > { %v1198_v63 = vsel %vm765_vm2, %v1191_v62, -inf }
 0x275   : > { %1199 = vmax.xlane.f32.xlu0 %v1198_v63  ;;  %v1955_v1 = vpop.f32.mrf.mxu0 }
 0x277   : > { %v2589_v2 = vpop.f32.mrf.mxu0 }
 0x278   : > { %v1201_v6 = vsel %vm765_vm2, %v2589_v2, -inf }
 0x279   : > { %v1956_v3 = vpop.f32.mrf.mxu0 }
 0x282   : > { %1085 = vrot.lane.b32.xlu1 %v761_v43, %s2314_s27  ;;  %s2712_s27 = scalar_lea.sflag [#allocation5], %s571_s21 }
 0x28b   : > { %953 = vrot.lane.b32.xlu0 %v761_v43, %s2309_s24  ;;  %s573_s24 = scalar_lea.vmem [#allocation9], %s1788_s18 }
 0x28c   : > { %s1673_s29 = sshll.u32 %s573_s24, 4  ;;  %s2709_s29 = int_to_ptr.vmem [resolvable:$true] %s1673_s29 }
 0x28d   : > { %s2232_s25 = scalar_lea.vmem %s2709_s29, 256 }
 0x28e   : > { %p2233_p10 = scmp.ne.s32.totalorder %s2709_s29, %s2232_s25 }
 0x290   : > { %p2234_p2 = pnand %p2233_p10, %p2797_p12 }
 0x292   : > { %p2235_p4 = pneg %p2234_p2 }
 0x2a6   : > { %1202 = vmax.xlane.f32.xlu1 %v1201_v6 }
 0x2b7   : > { %1217 = vrot.lane.b32.xlu1 %v761_v43, %s2315_s17  ;;  %s2316_s17 = smov [#allocation9]  }
 0x2b8   : > { %s2236_s20 = sshll.u32 %s2316_s17, 4  ;;  %s2237_s20 = int_to_ptr.vmem [resolvable:$false] %s2236_s20 }
 0x2b9   : > { %s2238_s23 = scalar_lea.vmem %s2237_s20, 512  ;;  %p2239_p7 = scmp.lt.s32.totalorder %s2709_s29, %s2237_s20 }
 0x2ba   : > { %p2240_p8 = scmp.lt.s32.totalorder %s2238_s23, %s2232_s25 }
 0x2bc   : > { %p2241_p11 = por %p2240_p8, %p2239_p7 }
 0x2be   : > { %p2242_p0 = pnand %p2241_p11, %p2235_p4 }
 0x2e6   : > { %v815_v7 = vpop.xlane.xlu1 %814 }
 0x2e7   : > { %v819_v8 = vsub.f32 %v806_v44, %v815_v7 }
 0x2e9   : > { %v821_v9 = vmul.f32 1.442695, %v819_v8 }
 0x2ea   : > { %v818_v10 = vpop.xlane.xlu0 %817 }
 0x2eb   : > { %v820_v11 = vsub.f32 %v809_v47, %v818_v10  ;;  %2114 = vpow2.f32 %v821_v9  ;;  %v2098_v9 = vld [vmem:[#allocation6 + $0x18] sm:$0xff]  }
 0x2ec   : > { %1964 = vmatpush3.bf16.msra.mxu0 %v2098_v9  ;;  %v2107_v9 = vld [vmem:[%s2764_s12 + $0x30] sm:$0xff]  }
 0x2ed   : > { %v823_v12 = vmul.f32 1.442695, %v820_v11  ;;  %1965 = vmatprep.subr.bf16.mxu0 %v2307_v0 }
 0x2ee   : > { %v935_v13 = vpop.xlane.xlu0 %934 }
 0x2ef   : > { %2116 = vpow2.f32 %v823_v12  ;;  %v939_v14 = vsub.f32 %v926_v50, %v935_v13 }
 0x2f1   : > { %v941_v15 = vmul.f32 1.442695, %v939_v14 }
 0x2f2   : > { %v938_v16 = vpop.xlane.xlu1 %937 }
 0x2f3   : > { %2118 = vpow2.f32 %v941_v15  ;;  %v940_v17 = vsub.f32 %v929_v53, %v938_v16 }
 0x2f5   : > { %v943_v18 = vmul.f32 1.442695, %v940_v17 }
 0x2f6   : > { %v1068_v19 = vpop.xlane.xlu0 %1067 }
 0x2f7   : > { %2120 = vpow2.f32 %v943_v18  ;;  %v1072_v20 = vsub.f32 %v1059_v56, %v1068_v19 }
 0x2f8   : > { %v2115_v23 = vpop.eup %2114 }
 0x2f9   : > { %v1074_v21 = vmul.f32 1.442695, %v1072_v20  ;;  %v825_v45 = vsel %vm765_vm2, %v2115_v23, 0.0 }
 0x2fa   : > { %v1071_v22 = vpop.xlane.xlu1 %1070 }
 0x2fb   : > { %2122 = vpow2.f32 %v1074_v21  ;;  %v1073_v24 = vsub.f32 %v1062_v59, %v1071_v22 }
 0x2fc   : > { %v2117_v25 = vpop.eup %2116 }
 0x2fd   : > { %v1076_v26 = vmul.f32 1.442695, %v1073_v24  ;;  %v831_v27 = vpack.c.bf16 %v2117_v25, %v2115_v23  ;;  %v828_v53 = vsel %vm765_vm2, %v2117_v25, 0.0 }
 0x2fe   : > { %v1200_v28 = vpop.xlane.xlu0 %1199  ;;  %v1086_v37 = vpop.permute.xlu1 %1085 }
 0x2ff   : > { %2124 = vpow2.f32 %v1076_v26  ;;  %v1204_v29 = vsub.f32 %v1191_v62, %v1200_v28  ;;  %1924 = vmatmul.mubr.msk.bf16.vlgmr.msra.gmra.mxu1 %vm765_vm2, %v831_v27  ;;  %v2099_v26 = vld [vmem:[#allocation6 + $0x10] sm:$0xff]   ;;  %v2100_v27 = vld [vmem:[#allocation6 + $0x8] sm:$0xff]   ;;  %v2101_v28 = vld [vmem:[#allocation6] sm:$0xff]  }
 0x300   : > { %v2119_v30 = vpop.eup %2118  ;;  %1935 = vmatprep.mubr.msk.bf16.mxu1 %vm2308_vm0, %v2307_v0  ;;  %1966 = vmatpush3.bf16.msra.mxu0 %v2099_v26 }
 0x301   : > { %v1206_v31 = vmul.f32 1.442695, %v1204_v29  ;;  %v945_v32 = vsel %vm765_vm2, %v2119_v30, 0.0  ;;  %1967 = vmatprep.subr.bf16.mxu0 %v2307_v0 }
 0x302   : > { %946 = vadd.xlane.f32.xlu0 %v945_v32  ;;  %v954_v33 = vpop.permute.xlu0 %953 }
 0x303   : > { %2126 = vpow2.f32 %v1206_v31  ;;  %1934 = vmatpush3.bf16.msra.mxu1 %v954_v33 }
 0x304   : > { %v2121_v34 = vpop.eup %2120  ;;  %1945 = vmatprep.subr.bf16.mxu1 %v2307_v0  ;;  %1968 = vmatpush3.bf16.msra.mxu0 %v2100_v27 }
 0x305   : > { %v948_v35 = vsel %vm765_vm2, %v2121_v34, 0.0  ;;  %v951_v36 = vpack.c.bf16 %v2121_v34, %v2119_v30  ;;  %1969 = vmatprep.subr.bf16.mxu0 %v2307_v0 }
 0x306   : > { %949 = vadd.xlane.f32.xlu1 %v948_v35 }
 0x307   : > { %1936 = vmatmul.mubr.msk.bf16.vlgmr.msra.gmra.mxu1 %vm765_vm2, %v951_v36 }
 0x308   : > { %v2123_v38 = vpop.eup %2122  ;;  %1946 = vmatpush3.bf16.msra.mxu1 %v1086_v37  ;;  %1947 = vmatprep.mubr.msk.bf16.mxu1 %vm2308_vm0, %v2307_v0 }
 0x309   : > { %v1078_v39 = vsel %vm765_vm2, %v2123_v38, 0.0  ;;  %1957 = vmatprep.subr.bf16.mxu1 %v2307_v0  ;;  %1970 = vmatpush3.bf16.msra.mxu0 %v2101_v28 }
 0x30a   : > { %1079 = vadd.xlane.f32.xlu0 %v1078_v39  ;;  %1987 = vmatprep.subr.bf16.mxu0 %v2307_v0 }
 0x30c   : > { %v2125_v40 = vpop.eup %2124 }
 0x30d   : > { %v1081_v41 = vsel %vm765_vm2, %v2125_v40, 0.0  ;;  %v1084_v42 = vpack.c.bf16 %v2125_v40, %v2123_v38 }
 0x30e   : > { %1082 = vadd.xlane.f32.xlu0 %v1081_v41 }
 0x30f   : > { %1948 = vmatmul.mubr.msk.bf16.vlgmr.msra.gmra.mxu1 %vm765_vm2, %v1084_v42 }
 0x310   : > { %v2127_v43 = vpop.eup %2126  ;;  %1959 = vmatprep.mubr.msk.bf16.mxu1 %vm2308_vm0, %v2307_v0 }
 0x311   : > { %v1210_v44 = vsel %vm765_vm2, %v2127_v43, 0.0 }
 0x312   : > { %1211 = vadd.xlane.f32.xlu1 %v1210_v44 }
 0x316   : > { %826 = vadd.xlane.f32.xlu1 %v825_v45 }
 0x32f   : > { %v1203_v46 = vpop.xlane.xlu1 %1202 }
 0x330   : > { %v1205_v47 = vsub.f32 %v2589_v2, %v1203_v46  ;;  %v1813_v46 = vld [vmem:[%s2759_s7] ss:$0 sm:$0xff] }
 0x332   : > { %v1208_v48 = vmul.f32 1.442695, %v1205_v47 }
 0x333   : > { %v1218_v49 = vpop.permute.xlu1 %1217 }
 0x334   : > { %2128 = vpow2.f32 %v1208_v48  ;;  %1958 = vmatpush3.bf16.msra.mxu1 %v1218_v49 }
 0x335   : > { %1975 = vmatprep.subr.bf16.mxu1 %v2307_v0 }
 0x341   : > { %v2129_v50 = vpop.eup %2128 }
 0x342   : > { %v1213_v51 = vsel %vm765_vm2, %v2129_v50, 0.0  ;;  %v1216_v52 = vpack.c.bf16 %v2129_v50, %v2127_v43 }
 0x343   : > { %1214 = vadd.xlane.f32.xlu0 %v1213_v51 }
 0x344   : > { %1960 = vmatmul.mubr.msk.bf16.vlgmr.msra.gmra.mxu1 %vm765_vm2, %v1216_v52 }
 0x345   : > { %1983 = vmatprep.mubr.msk.bf16.mxu1 %vm2308_vm0, %v2307_v0 }
 0x347   : > { %829 = vadd.xlane.f32.xlu0 %v828_v53 }
 0x38b   : > { %v947_v57 = vpop.xlane.xlu0 %946 }
 0x38f   : > { %v950_v54 = vpop.xlane.xlu1 %949 }
 0x393   : > { %v1080_v58 = vpop.xlane.xlu0 %1079 }
 0x397   : > { %v1083_v63 = vpop.xlane.xlu0 %1082 }
 0x39b   : > { %v1212_v55 = vpop.xlane.xlu1 %1211 }
 0x39f   : > { %v827_v56 = vpop.xlane.xlu1 %826 }
 0x3a0   : > { %2130 = vrcp.f32 %v827_v56 }
 0x3a1   : > { %2132 = vrcp.f32 %v947_v57 }
 0x3a2   : > { %2134 = vrcp.f32 %v950_v54 }
 0x3a3   : > { %2136 = vrcp.f32 %v1080_v58 }
 0x3a4   : > { %2138 = vrcp.f32 %v1083_v63 }
 0x3ad   : > { %v2131_v59 = vpop.eup %2130 }
 0x3ae   : > { %v2133_v3 = vpop.eup %2132 }
 0x3af   : > { %v2135_v10 = vpop.eup %2134 }
 0x3b0   : > { %v2137_v15 = vpop.eup %2136 }
 0x3b1   : > { %v2139_v20 = vpop.eup %2138 }
 0x3bf   : > { %v869_v60 = vpop.f32.mrf.mxu1 }
 0x3c0   : > { %v878_v61 = vmul.f32 %v2131_v59, %v869_v60 }
 0x3c1   : > { %v1925_v62 = vpop.f32.mrf.mxu1 }
 0x3c2   : > { %880 = vst.msk [vmem:[#allocation2] sm:$0xff] %vm765_vm2, %v878_v61 }
 0x3c3   : > { %v872_v1 = vpop.f32.mrf.mxu1 }
 0x3c5   : > { %v1926_v2 = vpop.f32.mrf.mxu1 }
 0x3c7   : > { %v993_v6 = vpop.f32.mrf.mxu1 }
 0x3c8   : > { %v1002_v7 = vmul.f32 %v2133_v3, %v993_v6  ;;  %v2102_v3 = vld [vmem:[#allocation8 + $0x18] sm:$0xff]   ;;  %v2104_v6 = vld [vmem:[#allocation8 + $0x8] sm:$0xff]  }
 0x3c9   : > { %v1937_v8 = vpop.f32.mrf.mxu1  ;;  %1976 = vmatpush3.bf16.msra.mxu1 %v2102_v3 }
 0x3ca   : > { %1006 = vrot.lane.b32.xlu1 %v1002_v7, %s2313_s30  ;;  %1977 = vmatprep.subr.bf16.mxu1 %v2307_v0  ;;  %v2105_v7 = vld [vmem:[#allocation8] sm:$0xff]   ;;  %v2106_v8 = vld [vmem:[%s2764_s12 + $0x38] sm:$0xff]  }
 0x3cb   : > { %v996_v11 = vpop.f32.mrf.mxu1 }
 0x3cc   : > { %v1003_v12 = vmul.f32 %v2135_v10, %v996_v11  ;;  %v1215_v13 = vpop.xlane.xlu0 %1214  ;;  %v2108_v10 = vld [vmem:[%s2764_s12 + $0x28] sm:$0xff]   ;;  %v2109_v11 = vld [vmem:[%s2764_s12 + $0x20] sm:$0xff]  }
 0x3cd   : > { %v1938_v14 = vpop.f32.mrf.mxu1 }
 0x3ce   : > { %1008 = vrot.lane.b32.xlu0 %v1003_v12, %s2313_s30  ;;  %v2110_v12 = vld [vmem:[%s2764_s12 + $0x18] sm:$0xff]   ;;  %s2707_s30 = scalar_lea.hbm %s2768_s16, %s1845_s6 }
 0x3cf   : > { %v1125_v16 = vpop.f32.mrf.mxu1 }
 0x3d0   : > { %v1134_v17 = vmul.f32 %v2137_v15, %v1125_v16  ;;  %v830_v18 = vpop.xlane.xlu0 %829 }
 0x3d1   : > { %2140 = vrcp.f32 %v830_v18  ;;  %v1949_v19 = vpop.f32.mrf.mxu1 }
 0x3d2   : > { %1138 = vrot.lane.b32.xlu1 %v1134_v17, %s2311_s19  ;;  %2142 = vrcp.f32 %v1212_v55 }
 0x3d3   : > { %v1128_v21 = vpop.f32.mrf.mxu1  ;;  %2144 = vrcp.f32 %v1215_v13 }
 0x3d4   : > { %v1135_v22 = vmul.f32 %v2139_v20, %v1128_v21  ;;  %v1819_v21 = vld [vmem:[%s2760_s8] ss:$0 sm:$0xff] }
 0x3d5   : > { %v1950_v23 = vpop.f32.mrf.mxu1 }
 0x3d6   : > { %1140 = vrot.lane.b32.xlu1 %v1135_v22, %s2311_s19 }
 0x3de   : > { %v2141_v24 = vpop.eup %2140 }
 0x3df   : > { %v879_v25 = vmul.f32 %v2141_v24, %v872_v1  ;;  %v2143_v29 = vpop.eup %2142 }
 0x3e0   : > { %v2145_v33 = vpop.eup %2144 }
 0x3e1   : > { %881 = vst.msk [vmem:[#allocation2 + $0x8] sm:$0xff] %vm765_vm2, %v879_v25  ;;  %v1820_v25 = vld [vmem:[%s2761_s9] ss:$0 sm:$0xff] }
 0x404   : > { %v1257_v30 = vpop.f32.mrf.mxu1 }
 0x405   : > { %v1266_v31 = vmul.f32 %v2143_v29, %v1257_v30  ;;  %v2111_v30 = vld [vmem:[%s2764_s12 + $0x10] sm:$0xff]  }
 0x406   : > { %v1961_v32 = vpop.f32.mrf.mxu1 }
 0x407   : > { %1270 = vrot.lane.b32.xlu0 %v1266_v31, %s2312_s28  ;;  %v2112_v31 = vld [vmem:[%s2764_s12 + $0x8] sm:$0xff]   ;;  %v2113_v32 = vld [vmem:[%s2764_s12] sm:$0xff]  }
 0x408   : > { %v1260_v34 = vpop.f32.mrf.mxu1 }
 0x409   : > { %v1267_v35 = vmul.f32 %v2145_v33, %v1260_v34  ;;  %v1821_v33 = vld [vmem:[%s2763_s11] ss:$0 sm:$0xff] }
 0x40a   : > { %v1962_v36 = vpop.f32.mrf.mxu1 }
 0x40b   : > { %1272 = vrot.lane.b32.xlu1 %v1267_v35, %s2312_s28 }
 0x43c   : > { %v1007_v37 = vpop.permute.xlu1 %1006 }
 0x43d   : > { %1013 = vst.msk [vmem:[#allocation2] sm:$0xff] %vm1012_vm3, %v1007_v37 }
 0x440   : > { %v1009_v38 = vpop.permute.xlu0 %1008 }
 0x441   : > { %1014 = vst.msk [vmem:[#allocation2 + $0x8] sm:$0xff] %vm1012_vm3, %v1009_v38 }
 0x444   : > { %v1139_v39 = vpop.permute.xlu1 %1138 }
 0x445   : > { %1145 = vst.msk [vmem:[#allocation2] sm:$0xff] %vm1144_vm4, %v1139_v39 }
 0x448   : > { %v1141_v40 = vpop.permute.xlu1 %1140 }
 0x449   : > { %1146 = vst.msk [vmem:[#allocation2 + $0x8] sm:$0xff] %vm1144_vm4, %v1141_v40 }
 0x479   : > { %v1271_v41 = vpop.permute.xlu0 %1270 }
 0x47a   : > { %1277 = vst.msk [vmem:[#allocation2] sm:$0xff] %vm1276_vm5, %v1271_v41 }
 0x47d   : > { %v1273_v42 = vpop.permute.xlu1 %1272 }
 0x47e   : > { %1278 = vst.msk [vmem:[#allocation2 + $0x8] sm:$0xff] %vm1276_vm5, %v1273_v42 }
 0x481   : > { %v1279_v43 = vld [vmem:[#allocation2] sm:$0xff] }
 0x485   : > { %v1280_v44 = vld [vmem:[#allocation2 + $0x8] sm:$0xff] }
 0x486   : > { %v1281_v45 = vpack.c.bf16 %v1280_v44, %v1279_v43 }
 0x488   : > { %1972 = vmatmul.mubr.msk.bf16.vlgmr.msra.gmra.mxu0 %vm632_vm1, %v1281_v45 }
 0x489   : > { %2003 = vmatprep.mubr.msk.bf16.mxu0 %vm2308_vm0, %v2307_v0  ;;  %1988 = vmatpush3.bf16.msra.mxu0 %v2106_v8 }
 0x48a   : > { %1989 = vmatprep.subr.bf16.mxu0 %v2307_v0 }
 0x48d   : > { %1990 = vmatpush3.bf16.msra.mxu0 %v2107_v9  ;;  %v1837_v9 = vld [vmem:[%s2767_s15] ss:$0 sm:$0xff] }
 0x48e   : > { %1991 = vmatprep.subr.bf16.mxu0 %v2307_v0 }
 0x491   : > { %1992 = vmatpush3.bf16.msra.mxu0 %v2108_v10 }
 0x492   : > { %1993 = vmatprep.subr.bf16.mxu0 %v2307_v0 }
 0x495   : > { %1994 = vmatpush3.bf16.msra.mxu0 %v2109_v11 }
 0x496   : > { %1995 = vmatprep.subr.bf16.mxu0 %v2307_v0 }
 0x499   : > { %1996 = vmatpush3.bf16.msra.mxu0 %v2110_v12 }
 0x49a   : > { %1997 = vmatprep.subr.bf16.mxu0 %v2307_v0 }
 0x49d   : > { %1998 = vmatpush3.bf16.msra.mxu0 %v2111_v30 }
 0x49e   : > { %1999 = vmatprep.subr.bf16.mxu0 %v2307_v0 }
 0x4a1   : > { %2000 = vmatpush3.bf16.msra.mxu0 %v2112_v31 }
 0x4a2   : > { %2001 = vmatprep.subr.bf16.mxu0 %v2307_v0 }
 0x4a5   : > { %2002 = vmatpush3.bf16.msra.mxu0 %v2113_v32 }
 0x548   : > { %v1358_v47 = vpop.f32.mrf.mxu0 }
 0x549   : > { %v1359_v48 = vadd.f32 %v1813_v46, %v1358_v47 }
 0x54a   : > { %v1973_v49 = vpop.f32.mrf.mxu0 }
 0x54b   : > { %v1365_v50 = vadd.f32 %v1359_v48, %v2525_v4 }
 0x54c   : > { %v1361_v51 = vpop.f32.mrf.mxu0 }
 0x54d   : > { %v1362_v52 = vadd.f32 %v1813_v46, %v1361_v51  ;;  %v1369_v53 = vsel %vm632_vm1, %v1365_v50, 0.0 }
 0x54e   : > { %1370 = vadd.xlane.f32.xlu0 %v1369_v53  ;;  %v1974_v54 = vpop.f32.mrf.mxu0 }
 0x54f   : > { %v1366_v55 = vadd.f32 %v1362_v52, %v2527_v5  ;;  %v2103_v5 = vld [vmem:[#allocation8 + $0x10] sm:$0xff]  }
 0x550   : > { %1978 = vmatpush3.bf16.msra.mxu1 %v2103_v5 }
 0x551   : > { %v1372_v56 = vsel %vm632_vm1, %v1366_v55, 0.0  ;;  %1979 = vmatprep.subr.bf16.mxu1 %v2307_v0 }
 0x552   : > { %1373 = vadd.xlane.f32.xlu1 %v1372_v56 }
 0x554   : > { %1980 = vmatpush3.bf16.msra.mxu1 %v2104_v6 }
 0x555   : > { %1981 = vmatprep.subr.bf16.mxu1 %v2307_v0  ;;  %v1827_v0 = vld [vmem:[%s2765_s13] ss:$0 sm:$0xff] }
 0x558   : > { %1982 = vmatpush3.bf16.msra.mxu1 %v2105_v7  ;;  %v1836_v7 = vld [vmem:[%s2766_s14] ss:$0 sm:$0xff] }
 0x5d7   : > { %v1371_v57 = vpop.xlane.xlu0 %1370 }
 0x5d8   : > { %v1376_v58 = vmul.f32 0.015625, %v1371_v57 }
 0x5da   : > { %v1378_v59 = vsub.f32 %v1365_v50, %v1376_v58 }
 0x5db   : > { %v1374_v60 = vpop.xlane.xlu1 %1373 }
 0x5dc   : > { %v1377_v61 = vmul.f32 0.015625, %v1374_v60  ;;  %v1380_v62 = vmul.f32 %v1378_v59, %v1378_v59 }
 0x5de   : > { %v1379_v63 = vsub.f32 %v1366_v55, %v1377_v61  ;;  %v1382_v4 = vsel %vm632_vm1, %v1380_v62, 0.0 }
 0x5df   : > { %1383 = vadd.xlane.f32.xlu0 %v1382_v4 }
 0x5e0   : > { %v1381_v1 = vmul.f32 %v1379_v63, %v1379_v63 }
 0x5e2   : > { %v1385_v2 = vsel %vm632_vm1, %v1381_v1, 0.0 }
 0x5e3   : > { %1386 = vadd.xlane.f32.xlu0 %v1385_v2 }
 0x668   : > { %v1384_v13 = vpop.xlane.xlu0 %1383 }
 0x669   : > { %v1388_v14 = vmul.f32 0.015625, %v1384_v13 }
 0x66b   : > { %v1390_v15 = vadd.f32 1e-05, %v1388_v14 }
 0x66c   : > { %v1387_v16 = vpop.xlane.xlu0 %1386 }
 0x66d   : > { %2146 = vrsqrt.f32 %v1390_v15  ;;  %v1389_v17 = vmul.f32 0.015625, %v1387_v16 }
 0x66f   : > { %v1391_v18 = vadd.f32 1e-05, %v1389_v17 }
 0x671   : > { %2148 = vrsqrt.f32 %v1391_v18 }
 0x67a   : > { %v2147_v19 = vpop.eup %2146 }
 0x67b   : > { %v1394_v20 = vmul.f32 %v2147_v19, %v1378_v59 }
 0x67d   : > { %v1402_v24 = vmul.f32 %v1819_v21, %v1394_v20 }
 0x67e   : > { %v2149_v22 = vpop.eup %2148 }
 0x67f   : > { %v1395_v23 = vmul.f32 %v2149_v22, %v1379_v63  ;;  %v1410_v27 = vadd.f32 %v1820_v25, %v1402_v24 }
 0x681   : > { %v1403_v26 = vmul.f32 %v1819_v21, %v1395_v23 }
 0x683   : > { %v1411_v28 = vadd.f32 %v1820_v25, %v1403_v26 }
 0x685   : > { %v1440_v29 = vpack.c.bf16 %v1411_v28, %v1410_v27 }
 0x687   : > { %1984 = vmatmul.mubr.msk.bf16.vlgmr.msra.gmra.mxu1 %vm632_vm1, %v1440_v29 }
 0x747   : > { %v1508_v34 = vpop.f32.mrf.mxu1 }
 0x748   : > { %v1509_v36 = vadd.f32 %v1821_v33, %v1508_v34 }
 0x749   : > { %v1985_v35 = vpop.f32.mrf.mxu1 }
 0x74a   : > { %v1515_v40 = vmax.f32 %v1509_v36, 0.0 }
 0x74b   : > { %v1511_v37 = vpop.f32.mrf.mxu1 }
 0x74c   : > { %v1512_v38 = vadd.f32 %v1821_v33, %v1511_v37 }
 0x74d   : > { %v1986_v39 = vpop.f32.mrf.mxu1 }
 0x74e   : > { %v1516_v41 = vmax.f32 %v1512_v38, 0.0 }
 0x750   : > { %v1517_v42 = vpack.c.bf16 %v1516_v41, %v1515_v40 }
 0x752   : > { %2004 = vmatmul.mubr.bf16.vlgmr.msra.gmra.mxu0 %v1517_v42 }
 0x812   : > { %v1606_v43 = vpop.f32.mrf.mxu0 }
 0x813   : > { %v1607_v44 = vadd.f32 %v1827_v0, %v1606_v43 }
 0x814   : > { %v2005_v45 = vpop.f32.mrf.mxu0 }
 0x815   : > { %v1613_v46 = vadd.f32 %v1607_v44, %v1410_v27 }
 0x816   : > { %v1609_v47 = vpop.f32.mrf.mxu0 }
 0x817   : > { %v1610_v48 = vadd.f32 %v1827_v0, %v1609_v47  ;;  %v1615_v49 = vsel %vm632_vm1, %v1613_v46, 0.0 }
 0x818   : > { %1616 = vadd.xlane.f32.xlu1 %v1615_v49  ;;  %v2006_v50 = vpop.f32.mrf.mxu0 }
 0x819   : > { %v1614_v51 = vadd.f32 %v1610_v48, %v1411_v28 }
 0x81b   : > { %v1618_v52 = vsel %vm632_vm1, %v1614_v51, 0.0 }
 0x81c   : > { %1619 = vadd.xlane.f32.xlu0 %v1618_v52 }
 0x8a1   : > { %v1617_v53 = vpop.xlane.xlu1 %1616 }
 0x8a2   : > { %v1621_v54 = vmul.f32 0.015625, %v1617_v53 }
 0x8a4   : > { %v1623_v55 = vsub.f32 %v1613_v46, %v1621_v54 }
 0x8a5   : > { %v1620_v56 = vpop.xlane.xlu0 %1619 }
 0x8a6   : > { %v1622_v57 = vmul.f32 0.015625, %v1620_v56  ;;  %v1625_v58 = vmul.f32 %v1623_v55, %v1623_v55 }
 0x8a8   : > { %v1624_v59 = vsub.f32 %v1614_v51, %v1622_v57  ;;  %v1627_v60 = vsel %vm632_vm1, %v1625_v58, 0.0 }
 0x8a9   : > { %1628 = vadd.xlane.f32.xlu1 %v1627_v60 }
 0x8aa   : > { %v1626_v61 = vmul.f32 %v1624_v59, %v1624_v59 }
 0x8ac   : > { %v1630_v62 = vsel %vm632_vm1, %v1626_v61, 0.0 }
 0x8ad   : > { %1631 = vadd.xlane.f32.xlu0 %v1630_v62 }
 0x932   : > { %v1629_v63 = vpop.xlane.xlu1 %1628 }
 0x933   : > { %v1633_v4 = vmul.f32 0.015625, %v1629_v63 }
 0x935   : > { %v1635_v1 = vadd.f32 1e-05, %v1633_v4 }
 0x936   : > { %v1632_v2 = vpop.xlane.xlu0 %1631 }
 0x937   : > { %2150 = vrsqrt.f32 %v1635_v1  ;;  %v1634_v3 = vmul.f32 0.015625, %v1632_v2 }
 0x939   : > { %v1636_v5 = vadd.f32 1e-05, %v1634_v3 }
 0x93b   : > { %2152 = vrsqrt.f32 %v1636_v5 }
 0x944   : > { %v2151_v6 = vpop.eup %2150 }
 0x945   : > { %v1639_v8 = vmul.f32 %v2151_v6, %v1623_v55 }
 0x947   : > { %v1647_v10 = vmul.f32 %v1836_v7, %v1639_v8 }
 0x948   : > { %v2153_v11 = vpop.eup %2152 }
 0x949   : > { %v1655_v12 = vadd.f32 %v1837_v9, %v1647_v10  ;;  %v1640_v13 = vmul.f32 %v2153_v11, %v1624_v59 }
 0x94b   : > { %v1648_v14 = vmul.f32 %v1836_v7, %v1640_v13  ;;  %1657 = vst.msk [vmem:[%s573_s24] sm:$0xff] %vm632_vm1, %v1655_v12 }
 0x94d   : > { %v1656_v15 = vadd.f32 %v1837_v9, %v1648_v14 }
 0x94f   : > { %1658 = vst.msk [vmem:[%s573_s24 + $0x8] sm:$0xff] %vm632_vm1, %v1656_v15 }
 0x950   : > { %2245 = shalt.err (!%p2242_p0)
}
 0x951   : > { %s2246_s21 = scalar_lea.hbm %s2707_s30, 256  ;;  %s2250_s4 = scalar_lea.hbm %s2768_s16, 512 }
 0x952   : > { %p2247_p6 = scmp.ne.s32.totalorder %s2707_s30, %s2246_s21  ;;  %p2251_p1 = scmp.lt.s32.totalorder %s2707_s30, %s2768_s16 }
 0x953   : > { %p2252_p5 = scmp.lt.s32.totalorder %s2250_s4, %s2246_s21 }
 0x954   : > { %p2248_p9 = pnand %p2247_p6, %p2797_p12 }
 0x955   : > { %p2253_p3 = por %p2252_p5, %p2251_p1 }
 0x956   : > { %p2249_p13 = pneg %p2248_p9 }
 0x958   : > { %p2254_p10 = pnand %p2253_p3, %p2249_p13 }
 0x95a   : > { %2257 = shalt.err (!%p2254_p10)
}
 0x95b   : > { %s2317_s19 = smov 128   ;;  %s2318_s28 = smov 8  }
 0x95c   : > { %2019 = dma.vmem_to_hbm [thread:$0]  (%p2797_p12), %s2709_s29, 256, %s2707_s30, %s2712_s27, %s2317_s19, %s2317_s19, %s2318_s28  }
 0x95d PF: > { %s2798_s25 = sld [smem:[#allocation15_spill]] }
 0x95e   : > { %s2799_s17 = sld [smem:[#allocation13_spill]] }
 0x95f   : > { %s2800_s20 = sld [smem:[#allocation18_spill]] }
 0x963   : > { %p2041_p2 = scmp.ge.s32.totalorder %s2798_s25, 2 }
 0x964   : > { %s1688_s23 = sand.u32 1, %s2799_s17  }
 0x965   : > { %p2801_p4 = scmp.ne.s32.totalorder %s2800_s20, 0  ;;  %s1689_s21 = scalar_lea.sflag [#allocation5], %s1688_s23 }
 0x967   : > { %p2032_p7 = pnand %p2041_p2, %p2801_p4 }
 0x969   : > { %p2033_p8 = pneg %p2032_p7 }
 0x96b   : > { %2283 = dma.done.wait (%p2033_p8), %s1689_s21, 256  }
 0x96c   : > { %2285 = vsyncadd (%p2033_p8), %s1689_s21, 4294967040  ;;  %s2802_s24 = sld [smem:[#allocation16_spill]]  ;;  %s2805_s21 = smov %s2292_s22 }
 0x96d   : > { %s2803_s18 = sld [smem:[#allocation14_spill]] }
 0x96e   : > { %s2804_s23 = sld [smem:[#allocation17_spill]] }
 0x972   : > { %p28_p11 = scmp.ge.s32.totalorder %s2802_s24, 4  }
 0x973   : > { %s2806_s22 = smov %s2803_s18 }
 0x974   :  { %30 = sbr.rel (!%p28_p11) target bundleno = 9 (0x9), region = 135 }
 0x979   :  { %1694 = vsyncpa [#allocation4], 1 }
 0x97a   :  { %1696 = vsyncpa [#allocation4 + $0x1], 1 }
 0x97b   :  { %1697 = vsyncpa [#allocation7], 1 }
 0x97c   :  { %1698 = vsyncpa [#allocation5], 1 }
 0x97d   :  { %1700 = vsyncpa [#allocation5 + $0x1], 1 }

</bundles_post_ra>
